<compile_context>
chip_gen: v7x
topology: tpu7x:2x2x1
jax: 0.10.0
libtpu: 0.0.40
codegen_flags: <defaults>
</compile_context>

<pallas_src>
import functools

import jax
import jax.numpy as jnp
from jax.experimental import pallas as pl
from jax.experimental.pallas import tpu as pltpu


def _ffwd_kernel(x_ref, w1_ref, b1_ref, w2_ref, b2_ref, o_ref, *, hidden_chunk):
    # Cast the activation tile to bf16 in-kernel (DMA stays in the native
    # dtype; the kernel is compute-bound at ~1000 FLOP/B, so the extra read
    # bytes and the VPU cast are effectively free).
    x = x_ref[...].astype(jnp.bfloat16)
    tm = x_ref.shape[0]
    H = w1_ref.shape[1]
    C = w2_ref.shape[1]

    acc = jnp.zeros((tm, C), jnp.float32)
    # Static (fully unrolled) loop over hidden-dim chunks.  Slices of the
    # VMEM-resident weights are static -> zero-cost views; the live f32
    # intermediate is only (tm, hidden_chunk).
    for c in range(H // hidden_chunk):
        lo, hi = c * hidden_chunk, (c + 1) * hidden_chunk
        h = jnp.dot(x, w1_ref[:, lo:hi], preferred_element_type=jnp.float32)
        h = jnp.maximum(h + b1_ref[:, lo:hi], 0.0)           # bias + ReLU (VPU)
        acc = acc + jnp.dot(h.astype(jnp.bfloat16), w2_ref[lo:hi, :],
                            preferred_element_type=jnp.float32)

    o_ref[...] = (acc + b2_ref[...]).astype(o_ref.dtype)


def _round_up(x, m):
    return ((x + m - 1) // m) * m


def _pick_hidden_chunk(H):
    for c in (512, 384, 256, 128):
        if H % c == 0:
            return c
    return H


def _pick_block_m(M):
    # Multiples of 16 (bf16 sublane tile).  Tiny M is latency-bound: use a
    # single grid step instead of forcing a 2-step pipeline with nothing to
    # hide.  Large M gets big tiles so the ~0.35 us fixed per-step overhead
    # stays <7% of per-step compute on v6e/v7x.
    if M <= 256:
        return _round_up(M, 16)
    if M <= 2048:
        bm = 256
    elif M <= 8192:
        bm = 512
    else:
        bm = 1024
    # Prefer an even tile count so the "parallel" axis splits cleanly across
    # v7x's two TensorCores.
    tiles = -(-M // bm)
    if tiles > 1 and tiles % 2 == 1:
        bm = _round_up(-(-M // (tiles + 1)), 16)
    return bm


@functools.partial(jax.jit, static_argnames=("block_m",))
def feed_forward(x, w1, b1, w2, b2, *, block_m=None):
    """x: (B, T, C); w1: (C, 4C); b1: (4C,); w2: (4C, C); b2: (C,).

    Weights are cast to bf16 (a no-op if already stored as bf16); both matmuls
    accumulate in f32 on the MXU.  Output dtype == x.dtype.
    """
    B, T, C = x.shape
    H = w1.shape[1]
    M = B * T

    if block_m is None:
        block_m = _pick_block_m(M)
    assert block_m % 16 == 0, "block_m must be a multiple of 16 (bf16 sublane tile)"
    hidden_chunk = _pick_hidden_chunk(H)

    x2d = x.reshape(M, C)                       # contiguous reshape: free, no copy
    w1_bf = w1.astype(jnp.bfloat16)             # no-op when params stored as bf16
    w2_bf = w2.astype(jnp.bfloat16)
    b1_2d = b1.reshape(1, H).astype(jnp.float32)
    b2_2d = b2.reshape(1, C).astype(jnp.float32)

    grid_m = pl.cdiv(M, block_m)
    out_dtype = x.dtype                         # keep module semantics; could be bf16 if downstream accepts it

    cost = pl.CostEstimate(
        flops=4 * M * C * H,                    # two matmuls, 2*M*C*H each
        transcendentals=0,
        bytes_accessed=(M * C * x.dtype.itemsize
                        + M * C * jnp.dtype(out_dtype).itemsize
                        + 2 * (C * H + H * C)   # bf16 weights
                        + 4 * (H + C)),         # f32 biases
    )

    out2d = pl.pallas_call(
        functools.partial(_ffwd_kernel, hidden_chunk=hidden_chunk),
        out_shape=jax.ShapeDtypeStruct((M, C), out_dtype),
        grid_spec=pltpu.PrefetchScalarGridSpec(
            num_scalar_prefetch=0,
            grid=(grid_m,),
            in_specs=[
                pl.BlockSpec((block_m, C), lambda i: (i, 0)),   # x row tile
                pl.BlockSpec((C, H), lambda i: (0, 0)),         # W1 (VMEM-resident)
                pl.BlockSpec((1, H), lambda i: (0, 0)),         # b1
                pl.BlockSpec((H, C), lambda i: (0, 0)),         # W2 (VMEM-resident)
                pl.BlockSpec((1, C), lambda i: (0, 0)),         # b2
            ],
            out_specs=pl.BlockSpec((block_m, C), lambda i: (i, 0)),
        ),
        compiler_params=pltpu.CompilerParams(
            # Row tiles are independent -> megacore sharding on v7x.
            dimension_semantics=("parallel",),
            # Explicit headroom: v5e scoped default is only 16 MiB; 48 MiB is
            # safely under every chip's physical VMEM (v7x: 64 MiB per TC).
            vmem_limit_bytes=48 * 1024 * 1024,
        ),
        cost_estimate=cost,
    )(x2d, w1_bf, b1_2d, w2_bf, b2_2d)

    return out2d.reshape(B, T, C)


if __name__ == "__main__":
    n_embd = 384          # from the module
    hidden = 4 * n_embd   # 1536

    key = jax.random.PRNGKey(0)
    kx, k1, k2, k3, k4, kx2 = jax.random.split(key, 6)

    # Parameters: f32 masters for the reference, bf16 copies stored once for
    # the kernel (simulating bf16-stored Linear weights).  Scaled normals
    # stand in for PyTorch's kaiming-uniform Linear init.
    w1_f32 = jax.random.normal(k1, (n_embd, hidden), jnp.float32) * (1.0 / n_embd ** 0.5)
    b1 = jax.random.normal(k2, (hidden,), jnp.float32) * 0.01
    w2_f32 = jax.random.normal(k3, (hidden, n_embd), jnp.float32) * (1.0 / hidden ** 0.5)
    b2 = jax.random.normal(k4, (n_embd,), jnp.float32) * 0.01
    w1_bf = w1_f32.astype(jnp.bfloat16)
    w2_bf = w2_f32.astype(jnp.bfloat16)

    def reference(x):
        # f32 eval-mode forward (dropout is identity).
        h = jnp.maximum(jnp.einsum("btc,ch->bth", x, w1_f32) + b1, 0.0)
        return jnp.einsum("bth,hc->btc", h, w2_f32) + b2

    # Case 1: tiny M (single grid step).
    B, T = 2, 8
    x = jax.random.normal(kx, (B, T, n_embd), dtype=jnp.float32)
    out = feed_forward(x, w1_bf, b1, w2_bf, b2)
    jax.block_until_ready(out)
    assert out.shape == (B, T, n_embd)
    # bf16 MXU operands with f32 accumulation: tolerance loosened vs f32 ref
    # (intentional precision trade).
    assert jnp.allclose(out, reference(x), atol=5e-2, rtol=5e-2), "mismatch (case 1)"

    # Case 2: multi-step grid with a ragged last row tile (M=300, block_m=256)
    # to exercise the pipelined / masked-boundary path.
    B2, T2 = 3, 100
    x2 = jax.random.normal(kx2, (B2, T2, n_embd), dtype=jnp.float32)
    out2 = feed_forward(x2, w1_bf, b1, w2_bf, b2)
    jax.block_until_ready(out2)
    assert out2.shape == (B2, T2, n_embd)
    assert jnp.allclose(out2, reference(x2), atol=5e-2, rtol=5e-2), "mismatch (case 2)"

    print("KERNEL_OK")
</pallas_src>

<mosaic_0001>
module attributes {stable_mosaic.version = 11 : i64} {
  func.func @_ffwd_kernel(%arg0: i32, %arg1: memref<16x384xf32, #tpu.memory_space<vmem>>, %arg2: memref<384x1536xbf16, #tpu.memory_space<vmem>>, %arg3: memref<1x1536xf32, #tpu.memory_space<vmem>>, %arg4: memref<1536x384xbf16, #tpu.memory_space<vmem>>, %arg5: memref<1x384xf32, #tpu.memory_space<vmem>>, %arg6: memref<16x384xf32, #tpu.memory_space<vmem>>) attributes {dimension_semantics = [#tpu.dimension_semantics<parallel>], iteration_bounds = array<i64: 1>, scalar_prefetch = 0 : i64, scratch_operands = 0 : i64, tpu.core_type = #tpu.core_type<tc>, window_params = [{transform_indices = @transform_0, window_bounds = array<i64: 16, 384>}, {pipeline_mode = #tpu.pipeline_mode<synchronous>, transform_indices = @transform_1, window_bounds = array<i64: 384, 1536>}, {pipeline_mode = #tpu.pipeline_mode<synchronous>, transform_indices = @transform_2, window_bounds = array<i64: 1, 1536>}, {pipeline_mode = #tpu.pipeline_mode<synchronous>, transform_indices = @transform_3, window_bounds = array<i64: 1536, 384>}, {pipeline_mode = #tpu.pipeline_mode<synchronous>, transform_indices = @transform_4, window_bounds = array<i64: 1, 384>}, {transform_indices = @transform_5, window_bounds = array<i64: 16, 384>}]} {
    %c0 = arith.constant 0 : index
    %c0_0 = arith.constant 0 : index
    %0 = vector.load %arg1[%c0, %c0_0] : memref<16x384xf32, #tpu.memory_space<vmem>>, vector<16x384xf32>
    %1 = arith.truncf %0 : vector<16x384xf32> to vector<16x384xbf16>
    %cst = arith.constant 0.000000e+00 : f32
    %2 = vector.broadcast %cst : f32 to vector<16x384xf32>
    %c0_1 = arith.constant 0 : index
    %c0_2 = arith.constant 0 : index
    %3 = vector.load %arg2[%c0_1, %c0_2] : memref<384x1536xbf16, #tpu.memory_space<vmem>>, vector<384x512xbf16>
    %cst_3 = arith.constant dense<0.000000e+00> : vector<16x512xf32>
    %4 = tpu.matmul %1, %3, %cst_3 {dimension_numbers = #tpu.dot_dimension_numbers<[1], [0], [0], [1], [0, 0, 1, 1], [], []>} : vector<16x384xbf16>, vector<384x512xbf16>, vector<16x512xf32> -> vector<16x512xf32>
    %c0_4 = arith.constant 0 : index
    %c0_5 = arith.constant 0 : index
    %5 = vector.load %arg3[%c0_4, %c0_5] : memref<1x1536xf32, #tpu.memory_space<vmem>>, vector<1x512xf32>
    %6 = vector.broadcast %5 : vector<1x512xf32> to vector<16x512xf32>
    %7 = arith.addf %4, %6 : vector<16x512xf32>
    %cst_6 = arith.constant 0.000000e+00 : f32
    %8 = vector.broadcast %cst_6 : f32 to vector<16x512xf32>
    %9 = arith.maximumf %7, %8 : vector<16x512xf32>
    %10 = arith.truncf %9 : vector<16x512xf32> to vector<16x512xbf16>
    %c0_7 = arith.constant 0 : index
    %c0_8 = arith.constant 0 : index
    %11 = vector.load %arg4[%c0_7, %c0_8] : memref<1536x384xbf16, #tpu.memory_space<vmem>>, vector<512x384xbf16>
    %cst_9 = arith.constant dense<0.000000e+00> : vector<16x384xf32>
    %12 = tpu.matmul %10, %11, %cst_9 {dimension_numbers = #tpu.dot_dimension_numbers<[1], [0], [0], [1], [0, 0, 1, 1], [], []>} : vector<16x512xbf16>, vector<512x384xbf16>, vector<16x384xf32> -> vector<16x384xf32>
    %13 = arith.addf %2, %12 : vector<16x384xf32>
    %c0_10 = arith.constant 0 : index
    %c512 = arith.constant 512 : index
    %14 = vector.load %arg2[%c0_10, %c512] : memref<384x1536xbf16, #tpu.memory_space<vmem>>, vector<384x512xbf16>
    %cst_11 = arith.constant dense<0.000000e+00> : vector<16x512xf32>
    %15 = tpu.matmul %1, %14, %cst_11 {dimension_numbers = #tpu.dot_dimension_numbers<[1], [0], [0], [1], [0, 0, 1, 1], [], []>} : vector<16x384xbf16>, vector<384x512xbf16>, vector<16x512xf32> -> vector<16x512xf32>
    %c0_12 = arith.constant 0 : index
    %c512_13 = arith.constant 512 : index
    %16 = vector.load %arg3[%c0_12, %c512_13] : memref<1x1536xf32, #tpu.memory_space<vmem>>, vector<1x512xf32>
    %17 = vector.broadcast %16 : vector<1x512xf32> to vector<16x512xf32>
    %18 = arith.addf %15, %17 : vector<16x512xf32>
    %cst_14 = arith.constant 0.000000e+00 : f32
    %19 = vector.broadcast %cst_14 : f32 to vector<16x512xf32>
    %20 = arith.maximumf %18, %19 : vector<16x512xf32>
    %21 = arith.truncf %20 : vector<16x512xf32> to vector<16x512xbf16>
    %c512_15 = arith.constant 512 : index
    %c0_16 = arith.constant 0 : index
    %22 = vector.load %arg4[%c512_15, %c0_16] : memref<1536x384xbf16, #tpu.memory_space<vmem>>, vector<512x384xbf16>
    %cst_17 = arith.constant dense<0.000000e+00> : vector<16x384xf32>
    %23 = tpu.matmul %21, %22, %cst_17 {dimension_numbers = #tpu.dot_dimension_numbers<[1], [0], [0], [1], [0, 0, 1, 1], [], []>} : vector<16x512xbf16>, vector<512x384xbf16>, vector<16x384xf32> -> vector<16x384xf32>
    %24 = arith.addf %13, %23 : vector<16x384xf32>
    %c0_18 = arith.constant 0 : index
    %c1024 = arith.constant 1024 : index
    %25 = vector.load %arg2[%c0_18, %c1024] : memref<384x1536xbf16, #tpu.memory_space<vmem>>, vector<384x512xbf16>
    %cst_19 = arith.constant dense<0.000000e+00> : vector<16x512xf32>
    %26 = tpu.matmul %1, %25, %cst_19 {dimension_numbers = #tpu.dot_dimension_numbers<[1], [0], [0], [1], [0, 0, 1, 1], [], []>} : vector<16x384xbf16>, vector<384x512xbf16>, vector<16x512xf32> -> vector<16x512xf32>
    %c0_20 = arith.constant 0 : index
    %c1024_21 = arith.constant 1024 : index
    %27 = vector.load %arg3[%c0_20, %c1024_21] : memref<1x1536xf32, #tpu.memory_space<vmem>>, vector<1x512xf32>
    %28 = vector.broadcast %27 : vector<1x512xf32> to vector<16x512xf32>
    %29 = arith.addf %26, %28 : vector<16x512xf32>
    %cst_22 = arith.constant 0.000000e+00 : f32
    %30 = vector.broadcast %cst_22 : f32 to vector<16x512xf32>
    %31 = arith.maximumf %29, %30 : vector<16x512xf32>
    %32 = arith.truncf %31 : vector<16x512xf32> to vector<16x512xbf16>
    %c1024_23 = arith.constant 1024 : index
    %c0_24 = arith.constant 0 : index
    %33 = vector.load %arg4[%c1024_23, %c0_24] : memref<1536x384xbf16, #tpu.memory_space<vmem>>, vector<512x384xbf16>
    %cst_25 = arith.constant dense<0.000000e+00> : vector<16x384xf32>
    %34 = tpu.matmul %32, %33, %cst_25 {dimension_numbers = #tpu.dot_dimension_numbers<[1], [0], [0], [1], [0, 0, 1, 1], [], []>} : vector<16x512xbf16>, vector<512x384xbf16>, vector<16x384xf32> -> vector<16x384xf32>
    %35 = arith.addf %24, %34 : vector<16x384xf32>
    %c0_26 = arith.constant 0 : index
    %c0_27 = arith.constant 0 : index
    %36 = vector.load %arg5[%c0_26, %c0_27] : memref<1x384xf32, #tpu.memory_space<vmem>>, vector<1x384xf32>
    %37 = vector.broadcast %36 : vector<1x384xf32> to vector<16x384xf32>
    %38 = arith.addf %35, %37 : vector<16x384xf32>
    %c0_28 = arith.constant 0 : index
    %c0_29 = arith.constant 0 : index
    %39 = vector.load %arg6[%c0_28, %c0_29] : memref<16x384xf32, #tpu.memory_space<vmem>>, vector<16x384xf32>
    tpu.vector_store %arg6[%c0_28, %c0_29], %38 {strides = array<i32>} : memref<16x384xf32, #tpu.memory_space<vmem>>, vector<16x384xf32>,
    return
  }
  func.func @transform_0(%arg0: i32) -> (i32, i32) {
    %c0_i32 = arith.constant 0 : i32
    %c0_i32_0 = arith.constant 0 : i32
    return %arg0, %c0_i32 : i32, i32
  }
  func.func @transform_1(%arg0: i32) -> (i32, i32) {
    %c0_i32 = arith.constant 0 : i32
    %c0_i32_0 = arith.constant 0 : i32
    %c0_i32_1 = arith.constant 0 : i32
    return %c0_i32, %c0_i32_0 : i32, i32
  }
  func.func @transform_2(%arg0: i32) -> (i32, i32) {
    %c0_i32 = arith.constant 0 : i32
    %c0_i32_0 = arith.constant 0 : i32
    %c0_i32_1 = arith.constant 0 : i32
    return %c0_i32, %c0_i32_0 : i32, i32
  }
  func.func @transform_3(%arg0: i32) -> (i32, i32) {
    %c0_i32 = arith.constant 0 : i32
    %c0_i32_0 = arith.constant 0 : i32
    %c0_i32_1 = arith.constant 0 : i32
    return %c0_i32, %c0_i32_0 : i32, i32
  }
  func.func @transform_4(%arg0: i32) -> (i32, i32) {
    %c0_i32 = arith.constant 0 : i32
    %c0_i32_0 = arith.constant 0 : i32
    %c0_i32_1 = arith.constant 0 : i32
    return %c0_i32, %c0_i32_0 : i32, i32
  }
  func.func @transform_5(%arg0: i32) -> (i32, i32) {
    %c0_i32 = arith.constant 0 : i32
    %c0_i32_0 = arith.constant 0 : i32
    return %arg0, %c0_i32 : i32, i32
  }
}

</mosaic_0001>

<bundles_post_ra>
// kernel: feed_forward.1
= control target key start
LH: loop header
LB: loop body
LE: loop exit
PB: predicated region body
PF: predicated region fallthrough
CT: control target
= control target key end

     0   :  { %10 = vsyncpa [#allocation3], 0  ;;  %s6790_s0 = inlined_call_operand.hbm [shape: f32[16,384], index: 0, kind: input, shape index: {}]   ;;  %s6791_s1 = inlined_call_operand.hbm [shape: bf16[384,1536], index: 1, kind: input, shape index: {}]   ;;  %s6792_s2 = inlined_call_operand.vmem [shape: f32[1,1536], index: 2, kind: input, shape index: {}]   ;;  %s6793_s3 = inlined_call_operand.hbm [shape: bf16[1536,384], index: 3, kind: input, shape index: {}]   ;;  %s6794_s4 = inlined_call_operand.vmem [shape: f32[1,384], index: 4, kind: input, shape index: {}]   ;;  %s6795_s5 = inlined_call_operand.hbm [shape: f32[16,384], index: 5, kind: output, shape index: {}]  }
   0x1   :  { %11 = vsyncpa [#allocation6], 0 }
   0x2   :  { %12 = vsyncpa [#allocation4], 0  ;;  %s6592_s18 = smov [#allocation5]   ;;  %s6498_s22 = scalar_lea.hbm %s6791_s1, 36864 }
   0x3   :  { %s30_s19 = sshll.u32 %s6592_s18, 4  ;;  %p6499_p0 = scmp.ne.s32.totalorder %s6791_s1, %s6498_s22  ;;  %s31_s19 = int_to_ptr.vmem [resolvable:$true] %s30_s19 }
   0x4   :  { %p6502_p1 = scmp.lt.u32.totalorder %s6498_s22, %s6791_s1 }
   0x6   :  { %p6504_p2 = pnand %p6502_p1, %p6499_p0 }
   0x8   :  { %6507 = shalt.err (!%p6504_p2)
}
   0x9   :  { %s6508_s27 = scalar_lea.vmem %s31_s19, 36864  ;;  %p6513_p4 = scmp.lt.s32.totalorder %s31_s19, %s31_s19 }
   0xa   :  { %p6509_p3 = scmp.ne.s32.totalorder %s31_s19, %s6508_s27  ;;  %p6514_p5 = scmp.lt.s32.totalorder %s6508_s27, %s6508_s27 }
   0xc   :  { %p6515_p6 = por %p6514_p5, %p6513_p4 }
   0xe   :  { %p6516_p7 = pnand %p6515_p6, %p6509_p3 }
  0x10   :  { %6519 = shalt.err (!%p6516_p7)
}
  0x11   :  { %s6593_s28 = smov 768   ;;  %s6594_s29 = smov 48  }
  0x12   :  { %36 = dma.hbm_to_vmem [thread:$0]  %s6791_s1, 36864, %s31_s19, [#allocation6], %s6593_s28, %s6593_s28, %s6594_s29  }
  0x13   :  { %s6595_s7 = smov [#allocation2]   ;;  %s6520_s11 = scalar_lea.hbm %s6790_s0, 768 }
  0x14   :  { %s18_s8 = sshll.u32 %s6595_s7, 4  ;;  %p6521_p8 = scmp.ne.s32.totalorder %s6790_s0, %s6520_s11  ;;  %s19_s8 = int_to_ptr.vmem [resolvable:$true] %s18_s8 }
  0x15   :  { %p6524_p9 = scmp.lt.u32.totalorder %s6520_s11, %s6790_s0 }
  0x17   :  { %p6526_p10 = pnand %p6524_p9, %p6521_p8 }
  0x19   :  { %6529 = shalt.err (!%p6526_p10)
}
  0x1a   :  { %s6530_s16 = scalar_lea.vmem %s19_s8, 768  ;;  %p6535_p12 = scmp.lt.s32.totalorder %s19_s8, %s19_s8 }
  0x1b   :  { %p6531_p11 = scmp.ne.s32.totalorder %s19_s8, %s6530_s16  ;;  %p6536_p13 = scmp.lt.s32.totalorder %s6530_s16, %s6530_s16 }
  0x1d   :  { %p6537_p0 = por %p6536_p13, %p6535_p12 }
  0x1f   :  { %p6538_p1 = pnand %p6537_p0, %p6531_p11 }
  0x21   :  { %6541 = shalt.err (!%p6538_p1)
}
  0x22   :  { %s6596_s1 = smov 384   ;;  %s6597_s17 = smov 24  }
  0x23   :  { %24 = dma.hbm_to_vmem [thread:$0]  %s6790_s0, 768, %s19_s8, [#allocation3], %s6596_s1, %s6596_s1, %s6597_s17  }
  0x24   :  { %s6598_s20 = smov [#allocation7]   ;;  %s6542_s24 = scalar_lea.hbm %s6793_s3, 36864 }
  0x25   :  { %s44_s21 = sshll.u32 %s6598_s20, 4  ;;  %p6543_p2 = scmp.ne.s32.totalorder %s6793_s3, %s6542_s24  ;;  %s45_s21 = int_to_ptr.vmem [resolvable:$true] %s44_s21 }
  0x26   :  { %p6546_p3 = scmp.lt.u32.totalorder %s6542_s24, %s6793_s3 }
  0x28   :  { %p6548_p4 = pnand %p6546_p3, %p6543_p2 }
  0x2a   :  { %6551 = shalt.err (!%p6548_p4)
}
  0x2b   :  { %s6552_s29 = scalar_lea.vmem %s45_s21, 36864  ;;  %p6557_p6 = scmp.lt.s32.totalorder %s45_s21, %s45_s21 }
  0x2c   :  { %p6553_p5 = scmp.ne.s32.totalorder %s45_s21, %s6552_s29  ;;  %p6558_p7 = scmp.lt.s32.totalorder %s6552_s29, %s6552_s29 }
  0x2e   :  { %p6559_p8 = por %p6558_p7, %p6557_p6 }
  0x30   :  { %p6560_p9 = pnand %p6559_p8, %p6553_p5 }
  0x32   :  { %6563 = shalt.err (!%p6560_p9)
}
  0x33   :  { %s6599_s0 = smov 192   ;;  %s6600_s30 = smov 12  }
  0x34   :  { %50 = dma.hbm_to_vmem [thread:$0]  %s6793_s3, 36864, %s45_s21, [#allocation6], %s6599_s0, %s6599_s0, %s6600_s30  }
  0x35   :  { %6586 = dma.done.wait [#allocation3], 768  }
  0x36   :  { %6587 = vsyncadd [#allocation3], 4294966528 }
  0x37   :  { %6588 = dma.done.wait [#allocation6], 73728  }
  0x38   :  { %6589 = vsyncadd [#allocation6], 4294893568  ;;  %v5682_v0 = vld [vmem:[#allocation5 + $0x4] ss:$48 sps:$4 sm:$0xff]   ;;  %v5684_v1 = vld [vmem:[#allocation5 + $0xc] ss:$48 sps:$4 sm:$0xff]  }
  0x39   :  { %670 = vmatprep.subr.bf16.mxu0 %v5682_v0  ;;  %v5686_v2 = vld [vmem:[#allocation5] ss:$48 sps:$4 sm:$0xff]   ;;  %v5687_v3 = vld [vmem:[#allocation5 + $0x8] ss:$48 sps:$4 sm:$0xff]   ;;  %756 = vmatprep.subr.bf16.mxu1 %v5684_v1  ;;  %v5688_v4 = vld [vmem:[#allocation5 + $0x64] ss:$48 sps:$4 sm:$0xff]  }
  0x3a   :  { %671 = vmatpush1.bf16.msra.mxu0 %v5686_v2  ;;  %757 = vmatpush1.bf16.msra.mxu1 %v5687_v3  ;;  %v5690_v5 = vld [vmem:[#allocation5 + $0x6c] ss:$48 sps:$4 sm:$0xff]   ;;  %v5692_v6 = vld [vmem:[#allocation5 + $0x60] ss:$48 sps:$4 sm:$0xff]   ;;  %v5693_v7 = vld [vmem:[#allocation5 + $0x68] ss:$48 sps:$4 sm:$0xff]  }
  0x3b   :  { %672 = vmatprep.subr.bf16.mxu0 %v5688_v4  ;;  %758 = vmatprep.subr.bf16.mxu1 %v5690_v5  ;;  %v5694_v8 = vld [vmem:[#allocation5 + $0xc4] ss:$48 sps:$4 sm:$0xff]   ;;  %v5696_v9 = vld [vmem:[#allocation5 + $0xcc] ss:$48 sps:$4 sm:$0xff]   ;;  %v5698_v10 = vld [vmem:[#allocation5 + $0xc0] ss:$48 sps:$4 sm:$0xff]  }
  0x3c   :  { %v5699_v11 = vld [vmem:[#allocation5 + $0xc8] ss:$48 sps:$4 sm:$0xff]   ;;  %v5700_v12 = vld [vmem:[#allocation5 + $0x124] ss:$48 sps:$4 sm:$0xff]   ;;  %v5702_v13 = vld [vmem:[#allocation5 + $0x12c] ss:$48 sps:$4 sm:$0xff]  }
  0x3d   :  { %v5704_v14 = vld [vmem:[#allocation5 + $0x120] ss:$48 sps:$4 sm:$0xff]   ;;  %v5705_v15 = vld [vmem:[#allocation5 + $0x128] ss:$48 sps:$4 sm:$0xff]   ;;  %v5706_v16 = vld [vmem:[#allocation5 + $0x184] ss:$48 sps:$4 sm:$0xff]  }
  0x3e   :  { %673 = vmatpush1.bf16.msra.mxu0 %v5692_v6  ;;  %759 = vmatpush1.bf16.msra.mxu1 %v5693_v7  ;;  %v5708_v17 = vld [vmem:[#allocation5 + $0x18c] ss:$48 sps:$4 sm:$0xff]   ;;  %v5710_v18 = vld [vmem:[#allocation5 + $0x180] ss:$48 sps:$4 sm:$0xff]   ;;  %v5711_v19 = vld [vmem:[#allocation5 + $0x188] ss:$48 sps:$4 sm:$0xff]  }
  0x3f   :  { %674 = vmatprep.subr.bf16.mxu0 %v5694_v8  ;;  %760 = vmatprep.subr.bf16.mxu1 %v5696_v9  ;;  %v5712_v20 = vld [vmem:[#allocation5 + $0x1e4] ss:$48 sps:$4 sm:$0xff]   ;;  %v5714_v21 = vld [vmem:[#allocation5 + $0x1ec] ss:$48 sps:$4 sm:$0xff]   ;;  %v5716_v22 = vld [vmem:[#allocation5 + $0x1e0] ss:$48 sps:$4 sm:$0xff]  }
  0x40   :  { %v5717_v23 = vld [vmem:[#allocation5 + $0x1e8] ss:$48 sps:$4 sm:$0xff]   ;;  %v5718_v24 = vld [vmem:[#allocation5 + $0x244] ss:$48 sps:$4 sm:$0xff]   ;;  %v5720_v25 = vld [vmem:[#allocation5 + $0x24c] ss:$48 sps:$4 sm:$0xff]  }
  0x41   :  { %v5722_v26 = vld [vmem:[#allocation5 + $0x240] ss:$48 sps:$4 sm:$0xff]   ;;  %v5723_v27 = vld [vmem:[#allocation5 + $0x248] ss:$48 sps:$4 sm:$0xff]   ;;  %v5724_v28 = vld [vmem:[#allocation5 + $0x2a4] ss:$48 sps:$4 sm:$0xff]  }
  0x42   :  { %675 = vmatpush1.bf16.msra.mxu0 %v5698_v10  ;;  %761 = vmatpush1.bf16.msra.mxu1 %v5699_v11  ;;  %v5726_v29 = vld [vmem:[#allocation5 + $0x2ac] ss:$48 sps:$4 sm:$0xff]   ;;  %v5728_v30 = vld [vmem:[#allocation5 + $0x2a0] ss:$48 sps:$4 sm:$0xff]   ;;  %v5729_v31 = vld [vmem:[#allocation5 + $0x2a8] ss:$48 sps:$4 sm:$0xff]  }
  0x43   :  { %676 = vmatprep.subr.bf16.mxu0 %v5700_v12  ;;  %762 = vmatprep.subr.bf16.mxu1 %v5702_v13  ;;  %v5730_v32 = vld [vmem:[#allocation5 + $0x304] ss:$48 sps:$4 sm:$0xff]   ;;  %v5732_v33 = vld [vmem:[#allocation5 + $0x30c] ss:$48 sps:$4 sm:$0xff]   ;;  %v5734_v34 = vld [vmem:[#allocation5 + $0x300] ss:$48 sps:$4 sm:$0xff]  }
  0x44   :  { %v5735_v35 = vld [vmem:[#allocation5 + $0x308] ss:$48 sps:$4 sm:$0xff]   ;;  %v5736_v36 = vld [vmem:[#allocation5 + $0x364] ss:$48 sps:$4 sm:$0xff]   ;;  %v5738_v37 = vld [vmem:[#allocation5 + $0x36c] ss:$48 sps:$4 sm:$0xff]  }
  0x45   :  { %v5740_v38 = vld [vmem:[#allocation5 + $0x360] ss:$48 sps:$4 sm:$0xff]   ;;  %v5741_v39 = vld [vmem:[#allocation5 + $0x368] ss:$48 sps:$4 sm:$0xff]   ;;  %v5742_v40 = vld [vmem:[#allocation5 + $0x3c4] ss:$48 sps:$4 sm:$0xff]  }
  0x46   :  { %677 = vmatpush1.bf16.msra.mxu0 %v5704_v14  ;;  %763 = vmatpush1.bf16.msra.mxu1 %v5705_v15  ;;  %v5744_v41 = vld [vmem:[#allocation5 + $0x3cc] ss:$48 sps:$4 sm:$0xff]   ;;  %v5746_v42 = vld [vmem:[#allocation5 + $0x3c0] ss:$48 sps:$4 sm:$0xff]   ;;  %v5747_v43 = vld [vmem:[#allocation5 + $0x3c8] ss:$48 sps:$4 sm:$0xff]  }
  0x47   :  { %678 = vmatprep.subr.bf16.mxu0 %v5706_v16  ;;  %764 = vmatprep.subr.bf16.mxu1 %v5708_v17  ;;  %v5748_v44 = vld [vmem:[#allocation5 + $0x424] ss:$48 sps:$4 sm:$0xff]   ;;  %v5750_v45 = vld [vmem:[#allocation5 + $0x42c] ss:$48 sps:$4 sm:$0xff]   ;;  %v5752_v48 = vld [vmem:[#allocation5 + $0x420] ss:$48 sps:$4 sm:$0xff]  }
  0x48   :  { %v64_v46 = vld [vmem:[#allocation2 + $0x8] sm:$0xff]  ;;  %v67_v47 = vld [vmem:[#allocation2 + $0x20] sm:$0xff]  ;;  %v66_v5 = vld [vmem:[#allocation2 + $0x18] sm:$0xff]  ;;  %v6601_v16 = vmov 0  }
  0x49   :  { %v5753_v49 = vld [vmem:[#allocation5 + $0x428] ss:$48 sps:$4 sm:$0xff]   ;;  %v6672_v50 = vpack.c.bf16 %v67_v47, %v64_v46  ;;  %v5754_v51 = vld [vmem:[#allocation5 + $0x484] ss:$48 sps:$4 sm:$0xff]   ;;  %v5756_v52 = vld [vmem:[#allocation5 + $0x48c] ss:$48 sps:$4 sm:$0xff]  }
  0x4a   :  { %679 = vmatpush1.bf16.msra.mxu0 %v5710_v18  ;;  %765 = vmatpush1.bf16.msra.mxu1 %v5711_v19  ;;  %v5758_v53 = vld [vmem:[#allocation5 + $0x480] ss:$48 sps:$4 sm:$0xff]   ;;  %v5759_v54 = vld [vmem:[#allocation5 + $0x488] ss:$48 sps:$4 sm:$0xff]   ;;  %v5760_v55 = vld [vmem:[#allocation5 + $0x4e4] ss:$48 sps:$4 sm:$0xff]  }
  0x4b   :  { %680 = vmatprep.subr.bf16.mxu0 %v5712_v20  ;;  %766 = vmatprep.subr.bf16.mxu1 %v5714_v21  ;;  %v5762_v56 = vld [vmem:[#allocation5 + $0x4ec] ss:$48 sps:$4 sm:$0xff]   ;;  %v5764_v57 = vld [vmem:[#allocation5 + $0x4e0] ss:$48 sps:$4 sm:$0xff]   ;;  %v5765_v58 = vld [vmem:[#allocation5 + $0x4e8] ss:$48 sps:$4 sm:$0xff]  }
  0x4c   :  { %702 = vmatprep.mubr.bf16.mxu0 %v6672_v50  ;;  %788 = vmatprep.mubr.bf16.mxu1 %v6672_v50  ;;  %v5766_v59 = vld [vmem:[#allocation5 + $0x544] ss:$48 sps:$4 sm:$0xff]   ;;  %v5768_v60 = vld [vmem:[#allocation5 + $0x54c] ss:$48 sps:$4 sm:$0xff]   ;;  %v5770_v61 = vld [vmem:[#allocation5 + $0x540] ss:$48 sps:$4 sm:$0xff]  }
  0x4d   :  { %v5771_v62 = vld [vmem:[#allocation5 + $0x548] ss:$48 sps:$4 sm:$0xff]   ;;  %v5772_v63 = vld [vmem:[#allocation5 + $0x5a4] ss:$48 sps:$4 sm:$0xff]   ;;  %v5774_v0 = vld [vmem:[#allocation5 + $0x5ac] ss:$48 sps:$4 sm:$0xff]  }
  0x4e   :  { %681 = vmatpush1.bf16.msra.mxu0 %v5716_v22  ;;  %767 = vmatpush1.bf16.msra.mxu1 %v5717_v23  ;;  %v5776_v1 = vld [vmem:[#allocation5 + $0x5a0] ss:$48 sps:$4 sm:$0xff]   ;;  %v5777_v2 = vld [vmem:[#allocation5 + $0x5a8] ss:$48 sps:$4 sm:$0xff]   ;;  %v5780_v3 = vld [vmem:[#allocation5 + $0x604] ss:$48 sps:$4 sm:$0xff]  }
  0x4f   :  { %682 = vmatprep.subr.bf16.mxu0 %v5718_v24  ;;  %768 = vmatprep.subr.bf16.mxu1 %v5720_v25  ;;  %v63_v4 = vld [vmem:[#allocation2] sm:$0xff]  ;;  %v5783_v6 = vld [vmem:[#allocation5 + $0x60c] ss:$48 sps:$4 sm:$0xff]   ;;  %v5781_v9 = vld [vmem:[#allocation5 + $0x608] ss:$48 sps:$4 sm:$0xff]  }
  0x50   :  { %v5778_v7 = vld [vmem:[#allocation5 + $0x600] ss:$48 sps:$4 sm:$0xff]   ;;  %v6676_v8 = vpack.c.bf16 %v66_v5, %v63_v4  ;;  %v5786_v10 = vld [vmem:[#allocation5 + $0x664] ss:$48 sps:$4 sm:$0xff]   ;;  %v5789_v11 = vld [vmem:[#allocation5 + $0x66c] ss:$48 sps:$4 sm:$0xff]  }
  0x51   :  { %v5784_v12 = vld [vmem:[#allocation5 + $0x660] ss:$48 sps:$4 sm:$0xff]   ;;  %v5787_v13 = vld [vmem:[#allocation5 + $0x668] ss:$48 sps:$4 sm:$0xff]   ;;  %v5792_v14 = vld [vmem:[#allocation5 + $0x6c4] ss:$48 sps:$4 sm:$0xff]  }
  0x52   :  { %683 = vmatpush1.bf16.msra.mxu0 %v5722_v26  ;;  %769 = vmatpush1.bf16.msra.mxu1 %v5723_v27  ;;  %v5795_v15 = vld [vmem:[#allocation5 + $0x6cc] ss:$48 sps:$4 sm:$0xff]   ;;  %v5790_v17 = vld [vmem:[#allocation5 + $0x6c0] ss:$48 sps:$4 sm:$0xff]   ;;  %v5793_v18 = vld [vmem:[#allocation5 + $0x6c8] ss:$48 sps:$4 sm:$0xff]  }
  0x53   :  { %684 = vmatprep.subr.bf16.mxu0 %v5724_v28  ;;  %770 = vmatprep.subr.bf16.mxu1 %v5726_v29  ;;  %v5798_v19 = vld [vmem:[#allocation5 + $0x724] ss:$48 sps:$4 sm:$0xff]   ;;  %v5801_v20 = vld [vmem:[#allocation5 + $0x72c] ss:$48 sps:$4 sm:$0xff]   ;;  %v5796_v21 = vld [vmem:[#allocation5 + $0x720] ss:$48 sps:$4 sm:$0xff]  }
  0x54   :  { %v5799_v22 = vld [vmem:[#allocation5 + $0x728] ss:$48 sps:$4 sm:$0xff]   ;;  %v5804_v23 = vld [vmem:[#allocation5 + $0x784] ss:$48 sps:$4 sm:$0xff]   ;;  %v5807_v24 = vld [vmem:[#allocation5 + $0x78c] ss:$48 sps:$4 sm:$0xff]  }
  0x55   :  { %v5802_v25 = vld [vmem:[#allocation5 + $0x780] ss:$48 sps:$4 sm:$0xff]   ;;  %v5805_v26 = vld [vmem:[#allocation5 + $0x788] ss:$48 sps:$4 sm:$0xff]   ;;  %v5810_v27 = vld [vmem:[#allocation5 + $0x7e4] ss:$48 sps:$4 sm:$0xff]  }
  0x56   :  { %685 = vmatpush1.bf16.msra.mxu0 %v5728_v30  ;;  %771 = vmatpush1.bf16.msra.mxu1 %v5729_v31  ;;  %v5813_v28 = vld [vmem:[#allocation5 + $0x7ec] ss:$48 sps:$4 sm:$0xff]   ;;  %v5808_v29 = vld [vmem:[#allocation5 + $0x7e0] ss:$48 sps:$4 sm:$0xff]   ;;  %v5811_v30 = vld [vmem:[#allocation5 + $0x7e8] ss:$48 sps:$4 sm:$0xff]  }
  0x57   :  { %686 = vmatprep.subr.bf16.mxu0 %v5730_v32  ;;  %772 = vmatprep.subr.bf16.mxu1 %v5732_v33  ;;  %v5816_v31 = vld [vmem:[#allocation5 + $0x844] ss:$48 sps:$4 sm:$0xff]   ;;  %v5819_v32 = vld [vmem:[#allocation5 + $0x84c] ss:$48 sps:$4 sm:$0xff]   ;;  %v5814_v33 = vld [vmem:[#allocation5 + $0x840] ss:$48 sps:$4 sm:$0xff]  }
  0x58   :  { %v5834_v46 = vld [vmem:[#allocation5 + $0x74] ss:$48 sps:$4 sm:$0xff]   ;;  %v5837_v47 = vld [vmem:[#allocation5 + $0x7c] ss:$48 sps:$4 sm:$0xff]   ;;  %v5862_v5 = vld [vmem:[#allocation5 + $0x250] ss:$48 sps:$4 sm:$0xff]  }
  0x59   :  { %v5867_v4 = vld [vmem:[#allocation5 + $0x25c] ss:$48 sps:$4 sm:$0xff]  }
  0x5a   :  { %687 = vmatpush1.bf16.msra.mxu0 %v5734_v34  ;;  %773 = vmatpush1.bf16.msra.mxu1 %v5735_v35  ;;  %v5817_v34 = vld [vmem:[#allocation5 + $0x848] ss:$48 sps:$4 sm:$0xff]   ;;  %v5822_v35 = vld [vmem:[#allocation5 + $0x8a4] ss:$48 sps:$4 sm:$0xff]  }
  0x5b   :  { %688 = vmatprep.subr.bf16.mxu0 %v5736_v36  ;;  %774 = vmatprep.subr.bf16.mxu1 %v5738_v37  ;;  %v5825_v36 = vld [vmem:[#allocation5 + $0x8ac] ss:$48 sps:$4 sm:$0xff]   ;;  %v5820_v37 = vld [vmem:[#allocation5 + $0x8a0] ss:$48 sps:$4 sm:$0xff]  }
  0x5e   :  { %689 = vmatpush1.bf16.msra.mxu0 %v5740_v38  ;;  %775 = vmatpush1.bf16.msra.mxu1 %v5741_v39  ;;  %v5823_v38 = vld [vmem:[#allocation5 + $0x8a8] ss:$48 sps:$4 sm:$0xff]   ;;  %v65_v39 = vld [vmem:[#allocation2 + $0x10] sm:$0xff] }
  0x5f   :  { %690 = vmatprep.subr.bf16.mxu0 %v5742_v40  ;;  %776 = vmatprep.subr.bf16.mxu1 %v5744_v41  ;;  %v68_v40 = vld [vmem:[#allocation2 + $0x28] sm:$0xff]  ;;  %v5828_v41 = vld [vmem:[#allocation5 + $0x14] ss:$48 sps:$4 sm:$0xff]  }
  0x62   :  { %691 = vmatpush1.bf16.msra.mxu0 %v5746_v42  ;;  %777 = vmatpush1.bf16.msra.mxu1 %v5747_v43  ;;  %v5831_v42 = vld [vmem:[#allocation5 + $0x1c] ss:$48 sps:$4 sm:$0xff]   ;;  %v6682_v43 = vpack.c.bf16 %v68_v40, %v65_v39  ;;  %v5910_v39 = vld [vmem:[#allocation5 + $0x550] ss:$48 sps:$4 sm:$0xff]   ;;  %v5913_v40 = vld [vmem:[#allocation5 + $0x558] ss:$48 sps:$4 sm:$0xff]  }
  0x63   :  { %692 = vmatprep.subr.bf16.mxu0 %v5748_v44  ;;  %778 = vmatprep.subr.bf16.mxu1 %v5750_v45  ;;  %v5826_v44 = vld [vmem:[#allocation5 + $0x10] ss:$48 sps:$4 sm:$0xff]   ;;  %v5829_v45 = vld [vmem:[#allocation5 + $0x18] ss:$48 sps:$4 sm:$0xff]  }
  0x66   :  { %693 = vmatpush1.bf16.msra.mxu0 %v5752_v48  ;;  %779 = vmatpush1.bf16.msra.mxu1 %v5753_v49  ;;  %v5832_v48 = vld [vmem:[#allocation5 + $0x70] ss:$48 sps:$4 sm:$0xff]   ;;  %v5835_v49 = vld [vmem:[#allocation5 + $0x78] ss:$48 sps:$4 sm:$0xff]  }
  0x67   :  { %694 = vmatprep.subr.bf16.mxu0 %v5754_v51  ;;  %780 = vmatprep.subr.bf16.mxu1 %v5756_v52  ;;  %v5840_v51 = vld [vmem:[#allocation5 + $0xd4] ss:$48 sps:$4 sm:$0xff]   ;;  %v5843_v52 = vld [vmem:[#allocation5 + $0xdc] ss:$48 sps:$4 sm:$0xff]  }
  0x6a   :  { %695 = vmatpush1.bf16.msra.mxu0 %v5758_v53  ;;  %781 = vmatpush1.bf16.msra.mxu1 %v5759_v54  ;;  %v5838_v53 = vld [vmem:[#allocation5 + $0xd0] ss:$48 sps:$4 sm:$0xff]   ;;  %v5841_v54 = vld [vmem:[#allocation5 + $0xd8] ss:$48 sps:$4 sm:$0xff]  }
  0x6b   :  { %696 = vmatprep.subr.bf16.mxu0 %v5760_v55  ;;  %782 = vmatprep.subr.bf16.mxu1 %v5762_v56  ;;  %v5846_v55 = vld [vmem:[#allocation5 + $0x134] ss:$48 sps:$4 sm:$0xff]   ;;  %v5849_v56 = vld [vmem:[#allocation5 + $0x13c] ss:$48 sps:$4 sm:$0xff]  }
  0x6e   :  { %697 = vmatpush1.bf16.msra.mxu0 %v5764_v57  ;;  %783 = vmatpush1.bf16.msra.mxu1 %v5765_v58  ;;  %v5844_v57 = vld [vmem:[#allocation5 + $0x130] ss:$48 sps:$4 sm:$0xff]   ;;  %v5847_v58 = vld [vmem:[#allocation5 + $0x138] ss:$48 sps:$4 sm:$0xff]  }
  0x6f   :  { %698 = vmatprep.subr.bf16.mxu0 %v5766_v59  ;;  %784 = vmatprep.subr.bf16.mxu1 %v5768_v60  ;;  %v5852_v59 = vld [vmem:[#allocation5 + $0x194] ss:$48 sps:$4 sm:$0xff]   ;;  %v5855_v60 = vld [vmem:[#allocation5 + $0x19c] ss:$48 sps:$4 sm:$0xff]  }
  0x72   :  { %699 = vmatpush1.bf16.msra.mxu0 %v5770_v61  ;;  %785 = vmatpush1.bf16.msra.mxu1 %v5771_v62  ;;  %v5850_v61 = vld [vmem:[#allocation5 + $0x190] ss:$48 sps:$4 sm:$0xff]   ;;  %v5853_v62 = vld [vmem:[#allocation5 + $0x198] ss:$48 sps:$4 sm:$0xff]  }
  0x73   :  { %700 = vmatprep.subr.bf16.mxu0 %v5772_v63  ;;  %786 = vmatprep.subr.bf16.mxu1 %v5774_v0  ;;  %v5858_v63 = vld [vmem:[#allocation5 + $0x1f4] ss:$48 sps:$4 sm:$0xff]   ;;  %v5861_v0 = vld [vmem:[#allocation5 + $0x1fc] ss:$48 sps:$4 sm:$0xff]  }
  0x76   :  { %701 = vmatpush1.bf16.msra.mxu0 %v5776_v1  ;;  %787 = vmatpush1.bf16.msra.mxu1 %v5777_v2  ;;  %v5856_v1 = vld [vmem:[#allocation5 + $0x1f0] ss:$48 sps:$4 sm:$0xff]   ;;  %v5859_v2 = vld [vmem:[#allocation5 + $0x1f8] ss:$48 sps:$4 sm:$0xff]  }
  0x77   :  { %713 = vmatprep.subr.bf16.mxu0 %v5780_v3  ;;  %799 = vmatprep.subr.bf16.mxu1 %v5783_v6  ;;  %v5864_v3 = vld [vmem:[#allocation5 + $0x254] ss:$48 sps:$4 sm:$0xff]   ;;  %v5865_v6 = vld [vmem:[#allocation5 + $0x258] ss:$48 sps:$4 sm:$0xff]  }
  0x79   :  { %703 = vmatmul.mubr.bf16.vlgmr.msra.gmra.mrb[0].mxu0 %v6676_v8  ;;  %789 = vmatmul.mubr.bf16.vlgmr.msra.gmra.mrb[0].mxu1 %v6676_v8 }
  0x7a   :  { %714 = vmatpush1.bf16.msra.mxu0 %v5778_v7  ;;  %800 = vmatpush1.bf16.msra.mxu1 %v5781_v9  ;;  %v5870_v7 = vld [vmem:[#allocation5 + $0x2b4] ss:$48 sps:$4 sm:$0xff]   ;;  %v5873_v9 = vld [vmem:[#allocation5 + $0x2bc] ss:$48 sps:$4 sm:$0xff]  }
  0x7b   :  { %715 = vmatprep.subr.bf16.mxu0 %v5786_v10  ;;  %801 = vmatprep.subr.bf16.mxu1 %v5789_v11  ;;  %v5868_v10 = vld [vmem:[#allocation5 + $0x2b0] ss:$48 sps:$4 sm:$0xff]   ;;  %v5871_v11 = vld [vmem:[#allocation5 + $0x2b8] ss:$48 sps:$4 sm:$0xff]  }
  0x7c   :  { %745 = vmatprep.mubr.bf16.mxu0 %v6601_v16  ;;  %831 = vmatprep.mubr.bf16.mxu1 %v6601_v16 }
  0x7e   :  { %716 = vmatpush1.bf16.msra.mxu0 %v5784_v12  ;;  %802 = vmatpush1.bf16.msra.mxu1 %v5787_v13  ;;  %v5876_v12 = vld [vmem:[#allocation5 + $0x314] ss:$48 sps:$4 sm:$0xff]   ;;  %v5879_v13 = vld [vmem:[#allocation5 + $0x31c] ss:$48 sps:$4 sm:$0xff]  }
  0x7f   :  { %717 = vmatprep.subr.bf16.mxu0 %v5792_v14  ;;  %803 = vmatprep.subr.bf16.mxu1 %v5795_v15  ;;  %v5874_v14 = vld [vmem:[#allocation5 + $0x310] ss:$48 sps:$4 sm:$0xff]   ;;  %v5877_v15 = vld [vmem:[#allocation5 + $0x318] ss:$48 sps:$4 sm:$0xff]  }
  0x82   :  { %718 = vmatpush1.bf16.msra.mxu0 %v5790_v17  ;;  %804 = vmatpush1.bf16.msra.mxu1 %v5793_v18  ;;  %v5882_v17 = vld [vmem:[#allocation5 + $0x374] ss:$48 sps:$4 sm:$0xff]   ;;  %v5885_v18 = vld [vmem:[#allocation5 + $0x37c] ss:$48 sps:$4 sm:$0xff]  }
  0x83   :  { %719 = vmatprep.subr.bf16.mxu0 %v5798_v19  ;;  %805 = vmatprep.subr.bf16.mxu1 %v5801_v20  ;;  %v5880_v19 = vld [vmem:[#allocation5 + $0x370] ss:$48 sps:$4 sm:$0xff]   ;;  %v5883_v20 = vld [vmem:[#allocation5 + $0x378] ss:$48 sps:$4 sm:$0xff]  }
  0x86   :  { %720 = vmatpush1.bf16.msra.mxu0 %v5796_v21  ;;  %806 = vmatpush1.bf16.msra.mxu1 %v5799_v22  ;;  %v5888_v21 = vld [vmem:[#allocation5 + $0x3d4] ss:$48 sps:$4 sm:$0xff]   ;;  %v5891_v22 = vld [vmem:[#allocation5 + $0x3dc] ss:$48 sps:$4 sm:$0xff]  }
  0x87   :  { %721 = vmatprep.subr.bf16.mxu0 %v5804_v23  ;;  %807 = vmatprep.subr.bf16.mxu1 %v5807_v24  ;;  %v5886_v23 = vld [vmem:[#allocation5 + $0x3d0] ss:$48 sps:$4 sm:$0xff]   ;;  %v5889_v24 = vld [vmem:[#allocation5 + $0x3d8] ss:$48 sps:$4 sm:$0xff]  }
  0x8a   :  { %722 = vmatpush1.bf16.msra.mxu0 %v5802_v25  ;;  %808 = vmatpush1.bf16.msra.mxu1 %v5805_v26  ;;  %v5894_v25 = vld [vmem:[#allocation5 + $0x434] ss:$48 sps:$4 sm:$0xff]   ;;  %v5897_v26 = vld [vmem:[#allocation5 + $0x43c] ss:$48 sps:$4 sm:$0xff]  }
  0x8b   :  { %723 = vmatprep.subr.bf16.mxu0 %v5810_v27  ;;  %809 = vmatprep.subr.bf16.mxu1 %v5813_v28  ;;  %v5892_v27 = vld [vmem:[#allocation5 + $0x430] ss:$48 sps:$4 sm:$0xff]   ;;  %v5895_v28 = vld [vmem:[#allocation5 + $0x438] ss:$48 sps:$4 sm:$0xff]  }
  0x8e   :  { %724 = vmatpush1.bf16.msra.mxu0 %v5808_v29  ;;  %810 = vmatpush1.bf16.msra.mxu1 %v5811_v30  ;;  %v5900_v29 = vld [vmem:[#allocation5 + $0x494] ss:$48 sps:$4 sm:$0xff]   ;;  %v5903_v30 = vld [vmem:[#allocation5 + $0x49c] ss:$48 sps:$4 sm:$0xff]  }
  0x8f   :  { %725 = vmatprep.subr.bf16.mxu0 %v5816_v31  ;;  %811 = vmatprep.subr.bf16.mxu1 %v5819_v32  ;;  %v5898_v31 = vld [vmem:[#allocation5 + $0x490] ss:$48 sps:$4 sm:$0xff]   ;;  %v5901_v32 = vld [vmem:[#allocation5 + $0x498] ss:$48 sps:$4 sm:$0xff]  }
  0x92   :  { %726 = vmatpush1.bf16.msra.mxu0 %v5814_v33  ;;  %812 = vmatpush1.bf16.msra.mxu1 %v5817_v34  ;;  %v5906_v33 = vld [vmem:[#allocation5 + $0x4f4] ss:$48 sps:$4 sm:$0xff]   ;;  %v5909_v34 = vld [vmem:[#allocation5 + $0x4fc] ss:$48 sps:$4 sm:$0xff]  }
  0x93   :  { %727 = vmatprep.subr.bf16.mxu0 %v5822_v35  ;;  %813 = vmatprep.subr.bf16.mxu1 %v5825_v36  ;;  %v5904_v35 = vld [vmem:[#allocation5 + $0x4f0] ss:$48 sps:$4 sm:$0xff]   ;;  %v5907_v36 = vld [vmem:[#allocation5 + $0x4f8] ss:$48 sps:$4 sm:$0xff]  }
  0x96   :  { %728 = vmatpush1.bf16.msra.mxu0 %v5820_v37  ;;  %814 = vmatpush1.bf16.msra.mxu1 %v5823_v38  ;;  %v5912_v37 = vld [vmem:[#allocation5 + $0x554] ss:$48 sps:$4 sm:$0xff]   ;;  %v5915_v38 = vld [vmem:[#allocation5 + $0x55c] ss:$48 sps:$4 sm:$0xff]  }
  0x97   :  { %1580 = vmatprep.subr.bf16.mxu0 %v5828_v41  ;;  %1666 = vmatprep.subr.bf16.mxu1 %v5831_v42  ;;  %v5918_v41 = vld [vmem:[#allocation5 + $0x5b4] ss:$48 sps:$4 sm:$0xff]   ;;  %v5921_v42 = vld [vmem:[#allocation5 + $0x5bc] ss:$48 sps:$4 sm:$0xff]  }
  0x99   :  { %746 = vmatmul.mubr.bf16.vlgmr.msra.gmra.mrb[0].mxu0 %v6682_v43  ;;  %832 = vmatmul.mubr.bf16.vlgmr.msra.gmra.mrb[0].mxu1 %v6682_v43 }
  0x9a   :  { %1581 = vmatpush1.bf16.msra.mxu0 %v5826_v44  ;;  %1667 = vmatpush1.bf16.msra.mxu1 %v5829_v45  ;;  %v5916_v44 = vld [vmem:[#allocation5 + $0x5b0] ss:$48 sps:$4 sm:$0xff]   ;;  %v5919_v45 = vld [vmem:[#allocation5 + $0x5b8] ss:$48 sps:$4 sm:$0xff]  }
  0x9b   :  { %1582 = vmatprep.subr.bf16.mxu0 %v5834_v46  ;;  %1668 = vmatprep.subr.bf16.mxu1 %v5837_v47  ;;  %v5924_v46 = vld [vmem:[#allocation5 + $0x614] ss:$48 sps:$4 sm:$0xff]   ;;  %v5927_v47 = vld [vmem:[#allocation5 + $0x61c] ss:$48 sps:$4 sm:$0xff]  }
  0x9c   :  { %1612 = vmatprep.mubr.bf16.mxu0 %v6672_v50  ;;  %1698 = vmatprep.mubr.bf16.mxu1 %v6672_v50 }
  0x9e   :  { %1583 = vmatpush1.bf16.msra.mxu0 %v5832_v48  ;;  %1669 = vmatpush1.bf16.msra.mxu1 %v5835_v49  ;;  %v5922_v48 = vld [vmem:[#allocation5 + $0x610] ss:$48 sps:$4 sm:$0xff]   ;;  %v5925_v49 = vld [vmem:[#allocation5 + $0x618] ss:$48 sps:$4 sm:$0xff]  }
  0x9f   :  { %1584 = vmatprep.subr.bf16.mxu0 %v5840_v51  ;;  %1670 = vmatprep.subr.bf16.mxu1 %v5843_v52  ;;  %v5930_v51 = vld [vmem:[#allocation5 + $0x674] ss:$48 sps:$4 sm:$0xff]   ;;  %v5933_v52 = vld [vmem:[#allocation5 + $0x67c] ss:$48 sps:$4 sm:$0xff]  }
  0xa2   :  { %1585 = vmatpush1.bf16.msra.mxu0 %v5838_v53  ;;  %1671 = vmatpush1.bf16.msra.mxu1 %v5841_v54  ;;  %v5928_v53 = vld [vmem:[#allocation5 + $0x670] ss:$48 sps:$4 sm:$0xff]   ;;  %v5931_v54 = vld [vmem:[#allocation5 + $0x678] ss:$48 sps:$4 sm:$0xff]  }
  0xa3   :  { %1586 = vmatprep.subr.bf16.mxu0 %v5846_v55  ;;  %1672 = vmatprep.subr.bf16.mxu1 %v5849_v56  ;;  %v5936_v55 = vld [vmem:[#allocation5 + $0x6d4] ss:$48 sps:$4 sm:$0xff]   ;;  %v5939_v56 = vld [vmem:[#allocation5 + $0x6dc] ss:$48 sps:$4 sm:$0xff]  }
  0xa6   :  { %1587 = vmatpush1.bf16.msra.mxu0 %v5844_v57  ;;  %1673 = vmatpush1.bf16.msra.mxu1 %v5847_v58  ;;  %v5934_v57 = vld [vmem:[#allocation5 + $0x6d0] ss:$48 sps:$4 sm:$0xff]   ;;  %v5937_v58 = vld [vmem:[#allocation5 + $0x6d8] ss:$48 sps:$4 sm:$0xff]  }
  0xa7   :  { %1588 = vmatprep.subr.bf16.mxu0 %v5852_v59  ;;  %1674 = vmatprep.subr.bf16.mxu1 %v5855_v60  ;;  %v5942_v59 = vld [vmem:[#allocation5 + $0x734] ss:$48 sps:$4 sm:$0xff]   ;;  %v5945_v60 = vld [vmem:[#allocation5 + $0x73c] ss:$48 sps:$4 sm:$0xff]  }
  0xaa   :  { %1589 = vmatpush1.bf16.msra.mxu0 %v5850_v61  ;;  %1675 = vmatpush1.bf16.msra.mxu1 %v5853_v62  ;;  %v5940_v61 = vld [vmem:[#allocation5 + $0x730] ss:$48 sps:$4 sm:$0xff]   ;;  %v5943_v62 = vld [vmem:[#allocation5 + $0x738] ss:$48 sps:$4 sm:$0xff]  }
  0xab   :  { %1590 = vmatprep.subr.bf16.mxu0 %v5858_v63  ;;  %1676 = vmatprep.subr.bf16.mxu1 %v5861_v0  ;;  %v5948_v63 = vld [vmem:[#allocation5 + $0x794] ss:$48 sps:$4 sm:$0xff]   ;;  %v5951_v0 = vld [vmem:[#allocation5 + $0x79c] ss:$48 sps:$4 sm:$0xff]  }
  0xae   :  { %1591 = vmatpush1.bf16.msra.mxu0 %v5856_v1  ;;  %1677 = vmatpush1.bf16.msra.mxu1 %v5859_v2  ;;  %v5946_v1 = vld [vmem:[#allocation5 + $0x790] ss:$48 sps:$4 sm:$0xff]   ;;  %v5949_v2 = vld [vmem:[#allocation5 + $0x798] ss:$48 sps:$4 sm:$0xff]  }
  0xaf   :  { %1592 = vmatprep.subr.bf16.mxu0 %v5864_v3  ;;  %1678 = vmatprep.subr.bf16.mxu1 %v5867_v4  ;;  %v5954_v3 = vld [vmem:[#allocation5 + $0x7f4] ss:$48 sps:$4 sm:$0xff]   ;;  %v5957_v4 = vld [vmem:[#allocation5 + $0x7fc] ss:$48 sps:$4 sm:$0xff]  }
  0xb2   :  { %1593 = vmatpush1.bf16.msra.mxu0 %v5862_v5  ;;  %1679 = vmatpush1.bf16.msra.mxu1 %v5865_v6  ;;  %v5952_v5 = vld [vmem:[#allocation5 + $0x7f0] ss:$48 sps:$4 sm:$0xff]   ;;  %v5955_v6 = vld [vmem:[#allocation5 + $0x7f8] ss:$48 sps:$4 sm:$0xff]  }
  0xb3   :  { %1594 = vmatprep.subr.bf16.mxu0 %v5870_v7  ;;  %1680 = vmatprep.subr.bf16.mxu1 %v5873_v9  ;;  %v5960_v7 = vld [vmem:[#allocation5 + $0x854] ss:$48 sps:$4 sm:$0xff]   ;;  %v5963_v9 = vld [vmem:[#allocation5 + $0x85c] ss:$48 sps:$4 sm:$0xff]  }
  0xb6   :  { %1595 = vmatpush1.bf16.msra.mxu0 %v5868_v10  ;;  %1681 = vmatpush1.bf16.msra.mxu1 %v5871_v11  ;;  %v5958_v10 = vld [vmem:[#allocation5 + $0x850] ss:$48 sps:$4 sm:$0xff]   ;;  %v5961_v11 = vld [vmem:[#allocation5 + $0x858] ss:$48 sps:$4 sm:$0xff]  }
  0xb7   :  { %1596 = vmatprep.subr.bf16.mxu0 %v5876_v12  ;;  %1682 = vmatprep.subr.bf16.mxu1 %v5879_v13  ;;  %v5966_v12 = vld [vmem:[#allocation5 + $0x8b4] ss:$48 sps:$4 sm:$0xff]   ;;  %v5969_v13 = vld [vmem:[#allocation5 + $0x8bc] ss:$48 sps:$4 sm:$0xff]  }
  0xba   :  { %1597 = vmatpush1.bf16.msra.mxu0 %v5874_v14  ;;  %1683 = vmatpush1.bf16.msra.mxu1 %v5877_v15  ;;  %v5964_v14 = vld [vmem:[#allocation5 + $0x8b0] ss:$48 sps:$4 sm:$0xff]   ;;  %v5967_v15 = vld [vmem:[#allocation5 + $0x8b8] ss:$48 sps:$4 sm:$0xff]  }
  0xbb   :  { %1598 = vmatprep.subr.bf16.mxu0 %v5882_v17  ;;  %1684 = vmatprep.subr.bf16.mxu1 %v5885_v18  ;;  %v5972_v17 = vld [vmem:[#allocation7 + $0x304] ss:$12 sps:$4 sm:$0xff]   ;;  %v5970_v18 = vld [vmem:[#allocation7 + $0x300] ss:$12 sps:$4 sm:$0xff]  }
  0xbe   :  { %1599 = vmatpush1.bf16.msra.mxu0 %v5880_v19  ;;  %1685 = vmatpush1.bf16.msra.mxu1 %v5883_v20  ;;  %v5975_v19 = vld [vmem:[#allocation7 + $0x31c] ss:$12 sps:$4 sm:$0xff]   ;;  %v5973_v20 = vld [vmem:[#allocation7 + $0x318] ss:$12 sps:$4 sm:$0xff]  }
  0xbf   :  { %1600 = vmatprep.subr.bf16.mxu0 %v5888_v21  ;;  %1686 = vmatprep.subr.bf16.mxu1 %v5891_v22  ;;  %v5997_v21 = vld [vmem:[#allocation7 + $0x3c8] ss:$12 sps:$4 sm:$0xff]  }
  0xc0   :  { %v5998_v22 = vld [vmem:[#allocation7 + $0x308] ss:$12 sps:$4 sm:$0xff]  }
  0xc2   :  { %1601 = vmatpush1.bf16.msra.mxu0 %v5886_v23  ;;  %1687 = vmatpush1.bf16.msra.mxu1 %v5889_v24  ;;  %v5978_v23 = vld [vmem:[#allocation7 + $0x334] ss:$12 sps:$4 sm:$0xff]  }
  0xc3   :  { %1602 = vmatprep.subr.bf16.mxu0 %v5894_v25  ;;  %1688 = vmatprep.subr.bf16.mxu1 %v5897_v26  ;;  %v6002_v24 = vld [vmem:[#allocation7 + $0x3e0] ss:$12 sps:$4 sm:$0xff]   ;;  %v5976_v26 = vld [vmem:[#allocation7 + $0x330] ss:$12 sps:$4 sm:$0xff]  }
  0xc4   :  { %v6003_v25 = vld [vmem:[#allocation7 + $0x320] ss:$12 sps:$4 sm:$0xff]  }
  0xc6   :  { %1603 = vmatpush1.bf16.msra.mxu0 %v5892_v27  ;;  %1689 = vmatpush1.bf16.msra.mxu1 %v5895_v28  ;;  %v6007_v27 = vld [vmem:[#allocation7 + $0x3f8] ss:$12 sps:$4 sm:$0xff]  }
  0xc7   :  { %1604 = vmatprep.subr.bf16.mxu0 %v5900_v29  ;;  %1690 = vmatprep.subr.bf16.mxu1 %v5903_v30  ;;  %v5981_v28 = vld [vmem:[#allocation7 + $0x34c] ss:$12 sps:$4 sm:$0xff]   ;;  %v5979_v29 = vld [vmem:[#allocation7 + $0x348] ss:$12 sps:$4 sm:$0xff]   ;;  %v5984_v30 = vld [vmem:[#allocation7 + $0x364] ss:$12 sps:$4 sm:$0xff]  }
  0xca   :  { %1605 = vmatpush1.bf16.msra.mxu0 %v5898_v31  ;;  %1691 = vmatpush1.bf16.msra.mxu1 %v5901_v32  ;;  %v6008_v31 = vld [vmem:[#allocation7 + $0x338] ss:$12 sps:$4 sm:$0xff]   ;;  %v6012_v32 = vld [vmem:[#allocation7 + $0x410] ss:$12 sps:$4 sm:$0xff]  }
  0xcb   :  { %1606 = vmatprep.subr.bf16.mxu0 %v5906_v33  ;;  %1692 = vmatprep.subr.bf16.mxu1 %v5909_v34  ;;  %v6013_v33 = vld [vmem:[#allocation7 + $0x350] ss:$12 sps:$4 sm:$0xff]   ;;  %v5982_v34 = vld [vmem:[#allocation7 + $0x360] ss:$12 sps:$4 sm:$0xff]  }
  0xce   :  { %1607 = vmatpush1.bf16.msra.mxu0 %v5904_v35  ;;  %1693 = vmatpush1.bf16.msra.mxu1 %v5907_v36  ;;  %v6017_v35 = vld [vmem:[#allocation7 + $0x428] ss:$12 sps:$4 sm:$0xff]  }
  0xcf   :  { %1608 = vmatprep.subr.bf16.mxu0 %v5912_v37  ;;  %1694 = vmatprep.subr.bf16.mxu1 %v5915_v38  ;;  %v5987_v36 = vld [vmem:[#allocation7 + $0x37c] ss:$12 sps:$4 sm:$0xff]   ;;  %v5985_v38 = vld [vmem:[#allocation7 + $0x378] ss:$12 sps:$4 sm:$0xff]  }
  0xd0   :  { %v6018_v37 = vld [vmem:[#allocation7 + $0x368] ss:$12 sps:$4 sm:$0xff]  }
  0xd2   :  { %1609 = vmatpush1.bf16.msra.mxu0 %v5910_v39  ;;  %1695 = vmatpush1.bf16.msra.mxu1 %v5913_v40  ;;  %v6022_v39 = vld [vmem:[#allocation7 + $0x440] ss:$12 sps:$4 sm:$0xff]  }
  0xd3   :  { %1610 = vmatprep.subr.bf16.mxu0 %v5918_v41  ;;  %1696 = vmatprep.subr.bf16.mxu1 %v5921_v42  ;;  %v5990_v40 = vld [vmem:[#allocation7 + $0x394] ss:$12 sps:$4 sm:$0xff]   ;;  %v5988_v42 = vld [vmem:[#allocation7 + $0x390] ss:$12 sps:$4 sm:$0xff]  }
  0xd4   :  { %v6023_v41 = vld [vmem:[#allocation7 + $0x380] ss:$12 sps:$4 sm:$0xff]  }
  0xd6   :  { %1611 = vmatpush1.bf16.msra.mxu0 %v5916_v44  ;;  %1697 = vmatpush1.bf16.msra.mxu1 %v5919_v45  ;;  %v5993_v44 = vld [vmem:[#allocation7 + $0x3ac] ss:$12 sps:$4 sm:$0xff]   ;;  %v5991_v45 = vld [vmem:[#allocation7 + $0x3a8] ss:$12 sps:$4 sm:$0xff]  }
  0xd7   :  { %1623 = vmatprep.subr.bf16.mxu0 %v5924_v46  ;;  %1709 = vmatprep.subr.bf16.mxu1 %v5927_v47  ;;  %v5996_v46 = vld [vmem:[#allocation7 + $0x3c4] ss:$12 sps:$4 sm:$0xff]   ;;  %v5994_v47 = vld [vmem:[#allocation7 + $0x3c0] ss:$12 sps:$4 sm:$0xff]  }
  0xd9   :  { %1613 = vmatmul.mubr.bf16.vlgmr.msra.gmra.mrb[4].mxu0 %v6676_v8  ;;  %1699 = vmatmul.mubr.bf16.vlgmr.msra.gmra.mrb[4].mxu1 %v6676_v8 }
  0xda   :  { %1624 = vmatpush1.bf16.msra.mxu0 %v5922_v48  ;;  %1710 = vmatpush1.bf16.msra.mxu1 %v5925_v49  ;;  %v6001_v48 = vld [vmem:[#allocation7 + $0x3dc] ss:$12 sps:$4 sm:$0xff]   ;;  %v5999_v49 = vld [vmem:[#allocation7 + $0x3d8] ss:$12 sps:$4 sm:$0xff]  }
  0xdb   :  { %1625 = vmatprep.subr.bf16.mxu0 %v5930_v51  ;;  %1711 = vmatprep.subr.bf16.mxu1 %v5933_v52  ;;  %v6006_v51 = vld [vmem:[#allocation7 + $0x3f4] ss:$12 sps:$4 sm:$0xff]   ;;  %v6004_v52 = vld [vmem:[#allocation7 + $0x3f0] ss:$12 sps:$4 sm:$0xff]  }
  0xdc   :  { %1655 = vmatprep.mubr.bf16.mxu0 %v6601_v16  ;;  %1741 = vmatprep.mubr.bf16.mxu1 %v6601_v16 }
  0xde   :  { %1626 = vmatpush1.bf16.msra.mxu0 %v5928_v53  ;;  %1712 = vmatpush1.bf16.msra.mxu1 %v5931_v54  ;;  %v6011_v53 = vld [vmem:[#allocation7 + $0x40c] ss:$12 sps:$4 sm:$0xff]   ;;  %v6009_v54 = vld [vmem:[#allocation7 + $0x408] ss:$12 sps:$4 sm:$0xff]  }
  0xdf   :  { %1627 = vmatprep.subr.bf16.mxu0 %v5936_v55  ;;  %1713 = vmatprep.subr.bf16.mxu1 %v5939_v56  ;;  %v6016_v55 = vld [vmem:[#allocation7 + $0x424] ss:$12 sps:$4 sm:$0xff]   ;;  %v6014_v56 = vld [vmem:[#allocation7 + $0x420] ss:$12 sps:$4 sm:$0xff]  }
  0xe2   :  { %1628 = vmatpush1.bf16.msra.mxu0 %v5934_v57  ;;  %1714 = vmatpush1.bf16.msra.mxu1 %v5937_v58  ;;  %v6021_v57 = vld [vmem:[#allocation7 + $0x43c] ss:$12 sps:$4 sm:$0xff]   ;;  %v6019_v58 = vld [vmem:[#allocation7 + $0x438] ss:$12 sps:$4 sm:$0xff]  }
  0xe3   :  { %1629 = vmatprep.subr.bf16.mxu0 %v5942_v59  ;;  %1715 = vmatprep.subr.bf16.mxu1 %v5945_v60  ;;  %v6026_v59 = vld [vmem:[#allocation7 + $0x454] ss:$12 sps:$4 sm:$0xff]   ;;  %v6027_v60 = vld [vmem:[#allocation7 + $0x458] ss:$12 sps:$4 sm:$0xff]  }
  0xe6   :  { %1630 = vmatpush1.bf16.msra.mxu0 %v5940_v61  ;;  %1716 = vmatpush1.bf16.msra.mxu1 %v5943_v62  ;;  %v6024_v61 = vld [vmem:[#allocation7 + $0x450] ss:$12 sps:$4 sm:$0xff]   ;;  %v6028_v62 = vld [vmem:[#allocation7 + $0x398] ss:$12 sps:$4 sm:$0xff]  }
  0xe7   :  { %1631 = vmatprep.subr.bf16.mxu0 %v5948_v63  ;;  %1717 = vmatprep.subr.bf16.mxu1 %v5951_v0  ;;  %v6031_v63 = vld [vmem:[#allocation7 + $0x46c] ss:$12 sps:$4 sm:$0xff]   ;;  %v6032_v0 = vld [vmem:[#allocation7 + $0x470] ss:$12 sps:$4 sm:$0xff]  }
  0xea   :  { %1632 = vmatpush1.bf16.msra.mxu0 %v5946_v1  ;;  %1718 = vmatpush1.bf16.msra.mxu1 %v5949_v2  ;;  %v6029_v1 = vld [vmem:[#allocation7 + $0x468] ss:$12 sps:$4 sm:$0xff]   ;;  %v6033_v2 = vld [vmem:[#allocation7 + $0x3b0] ss:$12 sps:$4 sm:$0xff]  }
  0xeb   :  { %1633 = vmatprep.subr.bf16.mxu0 %v5954_v3  ;;  %1719 = vmatprep.subr.bf16.mxu1 %v5957_v4  ;;  %v6036_v3 = vld [vmem:[#allocation7 + $0x484] ss:$12 sps:$4 sm:$0xff]   ;;  %v6037_v4 = vld [vmem:[#allocation7 + $0x548] ss:$12 sps:$4 sm:$0xff]  }
  0xee   :  { %1634 = vmatpush1.bf16.msra.mxu0 %v5952_v5  ;;  %1720 = vmatpush1.bf16.msra.mxu1 %v5955_v6  ;;  %v170_v5 = vlaneseq }
  0xef   :  { %1635 = vmatprep.subr.bf16.mxu0 %v5960_v7  ;;  %1721 = vmatprep.subr.bf16.mxu1 %v5963_v9  ;;  %v168_v7 = vld [vmem:[%s6792_s2] sm:$0xf] }
  0xf0   :  { %v171_v6 = vshrl.u32 %v170_v5, 7 }
  0xf2   :  { %1636 = vmatpush1.bf16.msra.mxu0 %v5958_v10  ;;  %1722 = vmatpush1.bf16.msra.mxu1 %v5961_v11  ;;  %v6697_v9 = vsub.s32 0, %v171_v6  ;;  %v6699_v10 = vsub.s32 2, %v171_v6  ;;  %v6701_v11 = vsub.s32 1, %v171_v6 }
  0xf3   :  { %1637 = vmatprep.subr.bf16.mxu0 %v5966_v12  ;;  %1723 = vmatprep.subr.bf16.mxu1 %v5969_v13  ;;  %v6703_v12 = vsub.s32 3, %v171_v6 }
  0xf4   :  { %v173_v13 = vrot.slane %v168_v7, %v6697_v9 }
  0xf6   :  { %1638 = vmatpush1.bf16.msra.mxu0 %v5964_v14  ;;  %1724 = vmatpush1.bf16.msra.mxu1 %v5967_v15  ;;  %v181_v14 = vrot.slane %v168_v7, %v6699_v10  ;;  %v177_v15 = vrot.slane %v168_v7, %v6701_v11 }
  0xf7   :  { %2404 = vmatprep.subr.bf16.mxu0 %v5972_v17  ;;  %5471 = vmatprep.subr.bf16.mxu1 %v5997_v21  ;;  %v185_v17 = vrot.slane %v168_v7, %v6703_v12 }
  0xf9   :  { %1656 = vmatmul.mubr.bf16.vlgmr.msra.gmra.mrb[4].mxu0 %v6682_v43  ;;  %1742 = vmatmul.mubr.bf16.vlgmr.msra.gmra.mrb[4].mxu1 %v6682_v43 }
  0xfa   :  { %2405 = vmatpush1.bf16.msra.mxu0 %v5970_v18  ;;  %5472 = vmatpush3.bf16.msra.mxu1 %v5998_v22 }
  0xfb   :  { %2406 = vmatprep.subr.bf16.mxu0 %v5975_v19  ;;  %5473 = vmatprep.subr.bf16.mxu1 %v6002_v24 }
  0xfe   :  { %2407 = vmatpush1.bf16.msra.mxu0 %v5973_v20  ;;  %5474 = vmatpush3.bf16.msra.mxu1 %v6003_v25 }
  0xff   :  { %2408 = vmatprep.subr.bf16.mxu0 %v5978_v23  ;;  %5475 = vmatprep.subr.bf16.mxu1 %v6007_v27 }
 0x102   :  { %2409 = vmatpush1.bf16.msra.mxu0 %v5976_v26  ;;  %5476 = vmatpush3.bf16.msra.mxu1 %v6008_v31 }
 0x103   :  { %2410 = vmatprep.subr.bf16.mxu0 %v5981_v28  ;;  %5477 = vmatprep.subr.bf16.mxu1 %v6012_v32 }
 0x106   :  { %2411 = vmatpush1.bf16.msra.mxu0 %v5979_v29  ;;  %5478 = vmatpush3.bf16.msra.mxu1 %v6013_v33 }
 0x107   :  { %2412 = vmatprep.subr.bf16.mxu0 %v5984_v30  ;;  %5479 = vmatprep.subr.bf16.mxu1 %v6017_v35 }
 0x10a   :  { %2413 = vmatpush1.bf16.msra.mxu0 %v5982_v34  ;;  %5480 = vmatpush3.bf16.msra.mxu1 %v6018_v37 }
 0x10b   :  { %2414 = vmatprep.subr.bf16.mxu0 %v5987_v36  ;;  %5481 = vmatprep.subr.bf16.mxu1 %v6022_v39 }
 0x10e   :  { %2415 = vmatpush1.bf16.msra.mxu0 %v5985_v38  ;;  %5482 = vmatpush3.bf16.msra.mxu1 %v6023_v41 }
 0x10f   :  { %2416 = vmatprep.subr.bf16.mxu0 %v5990_v40  ;;  %5483 = vmatprep.subr.bf16.mxu1 %v6027_v60 }
 0x112   :  { %2417 = vmatpush1.bf16.msra.mxu0 %v5988_v42  ;;  %5484 = vmatpush3.bf16.msra.mxu1 %v6028_v62 }
 0x113   :  { %2418 = vmatprep.subr.bf16.mxu0 %v5993_v44  ;;  %5485 = vmatprep.subr.bf16.mxu1 %v6032_v0 }
 0x116   :  { %2419 = vmatpush1.bf16.msra.mxu0 %v5991_v45  ;;  %5486 = vmatpush3.bf16.msra.mxu1 %v6033_v2 }
 0x117   :  { %2420 = vmatprep.subr.bf16.mxu0 %v5996_v46  ;;  %5493 = vmatprep.subr.bf16.mxu1 %v6037_v4 }
 0x11a   :  { %2421 = vmatpush1.bf16.msra.mxu0 %v5994_v47  ;;  %v1078_v47 = vld [vmem:[%s6792_s2 + $0x4] sm:$0xf] }
 0x11b   :  { %2422 = vmatprep.subr.bf16.mxu0 %v6001_v48  ;;  %v1083_v48 = vrot.slane %v1078_v47, %v6697_v9 }
 0x11e   :  { %2423 = vmatpush1.bf16.msra.mxu0 %v5999_v49  ;;  %v1091_v49 = vrot.slane %v1078_v47, %v6699_v10 }
 0x11f   :  { %2424 = vmatprep.subr.bf16.mxu0 %v6006_v51  ;;  %v1087_v51 = vrot.slane %v1078_v47, %v6701_v11 }
 0x122   :  { %2425 = vmatpush1.bf16.msra.mxu0 %v6004_v52  ;;  %v1095_v52 = vrot.slane %v1078_v47, %v6703_v12  ;;  %v6062_v47 = vld [vmem:[#allocation7 + $0x5c0] ss:$12 sps:$4 sm:$0xff]  }
 0x123   :  { %2426 = vmatprep.subr.bf16.mxu0 %v6011_v53 }
 0x126   :  { %2427 = vmatpush1.bf16.msra.mxu0 %v6009_v54 }
 0x127   :  { %2428 = vmatprep.subr.bf16.mxu0 %v6016_v55 }
 0x12a   :  { %2429 = vmatpush1.bf16.msra.mxu0 %v6014_v56 }
 0x12b   :  { %2430 = vmatprep.subr.bf16.mxu0 %v6021_v57 }
 0x12e   :  { %2431 = vmatpush1.bf16.msra.mxu0 %v6019_v58 }
 0x12f   :  { %2432 = vmatprep.subr.bf16.mxu0 %v6026_v59 }
 0x132   :  { %2433 = vmatpush1.bf16.msra.mxu0 %v6024_v61 }
 0x133   :  { %2434 = vmatprep.subr.bf16.mxu0 %v6031_v63 }
 0x136   :  { %2435 = vmatpush1.bf16.msra.mxu0 %v6029_v1 }
 0x137   :  { %2447 = vmatprep.subr.bf16.mxu0 %v6036_v3 }
 0x16c   :  { %v747_v18 = vpop.f32.mrb[0].mxu0  ;;  %v833_v19 = vpop.f32.mrb[0].mxu1 }
 0x16d   :  { %v5603_v20 = vadd.f32 %v747_v18, %v173_v13  ;;  %v5607_v21 = vadd.f32 %v833_v19, %v181_v14  ;;  %v749_v22 = vpop.f32.mrb[1].mxu0  ;;  %v835_v23 = vpop.f32.mrb[1].mxu1 }
 0x16e   :  { %v5604_v24 = vadd.f32 %v749_v22, %v177_v15  ;;  %v5608_v25 = vadd.f32 %v835_v23, %v185_v17  ;;  %v751_v26 = vpop.f32.mrb[2].mxu0  ;;  %v837_v27 = vpop.f32.mrb[2].mxu1  ;;  %v6034_v23 = vld [vmem:[#allocation7 + $0x480] ss:$12 sps:$4 sm:$0xff]  }
 0x16f   :  { %v844_v28 = vmax.f32 %v5607_v21, 0.0  ;;  %v5605_v29 = vadd.f32 %v751_v26, %v173_v13  ;;  %v5609_v30 = vadd.f32 %v837_v27, %v181_v14  ;;  %v753_v31 = vpop.f32.mrb[3].mxu0  ;;  %v839_v32 = vpop.f32.mrb[3].mxu1  ;;  %v842_v35 = vmax.f32 %v5603_v20, 0.0  ;;  %v6042_v26 = vld [vmem:[#allocation7 + $0x560] ss:$12 sps:$4 sm:$0xff]  }
 0x170   :  { %v5606_v33 = vadd.f32 %v753_v31, %v177_v15  ;;  %v5610_v34 = vadd.f32 %v839_v32, %v185_v17  ;;  %v843_v38 = vmax.f32 %v5604_v24, 0.0  ;;  %v845_v39 = vmax.f32 %v5608_v25, 0.0  ;;  %v6038_v24 = vld [vmem:[#allocation7 + $0x488] ss:$12 sps:$4 sm:$0xff]   ;;  %v6039_v27 = vld [vmem:[#allocation7 + $0x498] ss:$12 sps:$4 sm:$0xff]  }
 0x171   :  { %v846_v36 = vmax.f32 %v5605_v29, 0.0  ;;  %v848_v37 = vmax.f32 %v5609_v30, 0.0  ;;  %v6041_v25 = vld [vmem:[#allocation7 + $0x49c] ss:$12 sps:$4 sm:$0xff]   ;;  %v6046_v29 = vld [vmem:[#allocation7 + $0x4b4] ss:$12 sps:$4 sm:$0xff]  }
 0x172   :  { %v847_v40 = vmax.f32 %v5606_v33, 0.0  ;;  %v849_v41 = vmax.f32 %v5610_v34, 0.0  ;;  %v6047_v30 = vld [vmem:[#allocation7 + $0x578] ss:$12 sps:$4 sm:$0xff]   ;;  %v6044_v31 = vld [vmem:[#allocation7 + $0x4b0] ss:$12 sps:$4 sm:$0xff]  }
 0x173   :  { %v6709_v42 = vpack.c.bf16 %v846_v36, %v842_v35  ;;  %v6711_v44 = vpack.c.bf16 %v848_v37, %v844_v28  ;;  %v6043_v28 = vld [vmem:[#allocation7 + $0x4a0] ss:$12 sps:$4 sm:$0xff]   ;;  %v6048_v32 = vld [vmem:[#allocation7 + $0x4b8] ss:$12 sps:$4 sm:$0xff]   ;;  %v6052_v34 = vld [vmem:[#allocation7 + $0x590] ss:$12 sps:$4 sm:$0xff]  }
 0x174   :  { %v6713_v45 = vpack.c.bf16 %v847_v40, %v843_v38  ;;  %v6715_v46 = vpack.c.bf16 %v849_v41, %v845_v39  ;;  %v6051_v33 = vld [vmem:[#allocation7 + $0x4cc] ss:$12 sps:$4 sm:$0xff]   ;;  %v6049_v35 = vld [vmem:[#allocation7 + $0x4c8] ss:$12 sps:$4 sm:$0xff]   ;;  %v6053_v36 = vld [vmem:[#allocation7 + $0x4d0] ss:$12 sps:$4 sm:$0xff]  }
 0x175   :  { %v6056_v37 = vld [vmem:[#allocation7 + $0x4e4] ss:$12 sps:$4 sm:$0xff]   ;;  %v6057_v38 = vld [vmem:[#allocation7 + $0x5a8] ss:$12 sps:$4 sm:$0xff]   ;;  %v6054_v39 = vld [vmem:[#allocation7 + $0x4e0] ss:$12 sps:$4 sm:$0xff]  }
 0x176   :  { %v6058_v40 = vld [vmem:[#allocation7 + $0x4e8] ss:$12 sps:$4 sm:$0xff]  }
 0x177   :  { %v6061_v41 = vld [vmem:[#allocation7 + $0x4fc] ss:$12 sps:$4 sm:$0xff]  }
 0x1cc   :  { %v1657_v53 = vpop.f32.mrb[4].mxu0  ;;  %v1743_v54 = vpop.f32.mrb[4].mxu1 }
 0x1cd   :  { %v5611_v55 = vadd.f32 %v1657_v53, %v1083_v48  ;;  %v5615_v56 = vadd.f32 %v1743_v54, %v1091_v49  ;;  %v1659_v57 = vpop.f32.mrb[5].mxu0  ;;  %v1745_v58 = vpop.f32.mrb[5].mxu1  ;;  %v6064_v53 = vld [vmem:[#allocation7 + $0x510] ss:$12 sps:$4 sm:$0xff]   ;;  %v6068_v54 = vld [vmem:[#allocation7 + $0x518] ss:$12 sps:$4 sm:$0xff]  }
 0x1ce   :  { %v5612_v59 = vadd.f32 %v1659_v57, %v1087_v51  ;;  %v5616_v60 = vadd.f32 %v1745_v58, %v1095_v52  ;;  %v1661_v61 = vpop.f32.mrb[6].mxu0  ;;  %v1747_v62 = vpop.f32.mrb[6].mxu1  ;;  %v6069_v57 = vld [vmem:[#allocation7 + $0x528] ss:$12 sps:$4 sm:$0xff]   ;;  %v6073_v58 = vld [vmem:[#allocation7 + $0x530] ss:$12 sps:$4 sm:$0xff]  }
 0x1cf   :  { %v1754_v63 = vmax.f32 %v5615_v56, 0.0  ;;  %v5613_v0 = vadd.f32 %v1661_v61, %v1083_v48  ;;  %v5617_v1 = vadd.f32 %v1747_v62, %v1091_v49  ;;  %v1663_v2 = vpop.f32.mrb[7].mxu0  ;;  %v1749_v3 = vpop.f32.mrb[7].mxu1  ;;  %v1752_v6 = vmax.f32 %v5611_v55, 0.0  ;;  %v6059_v48 = vld [vmem:[#allocation7 + $0x4f8] ss:$12 sps:$4 sm:$0xff]  }
 0x1d0   :  { %v5614_v4 = vadd.f32 %v1663_v2, %v1087_v51  ;;  %v5618_v5 = vadd.f32 %v1749_v3, %v1095_v52  ;;  %v1753_v14 = vmax.f32 %v5612_v59, 0.0  ;;  %v1755_v15 = vmax.f32 %v5616_v60, 0.0  ;;  %v6063_v49 = vld [vmem:[#allocation7 + $0x500] ss:$12 sps:$4 sm:$0xff]   ;;  %v6067_v52 = vld [vmem:[#allocation7 + $0x5d8] ss:$12 sps:$4 sm:$0xff]  }
 0x1d1   :  { %v1756_v7 = vmax.f32 %v5613_v0, 0.0  ;;  %v1758_v13 = vmax.f32 %v5617_v1, 0.0  ;;  %v6066_v51 = vld [vmem:[#allocation7 + $0x514] ss:$12 sps:$4 sm:$0xff]   ;;  %v6071_v55 = vld [vmem:[#allocation7 + $0x52c] ss:$12 sps:$4 sm:$0xff]  }
 0x1d2   :  { %v1757_v17 = vmax.f32 %v5614_v4, 0.0  ;;  %v1759_v18 = vmax.f32 %v5618_v5, 0.0  ;;  %v6072_v56 = vld [vmem:[#allocation7 + $0x5f0] ss:$12 sps:$4 sm:$0xff]   ;;  %v6077_v60 = vld [vmem:[#allocation7 + $0xc8] ss:$12 sps:$4 sm:$0xff]  }
 0x1d3   :  { %v1760_v19 = vpack.c.bf16 %v1756_v7, %v1752_v6  ;;  %v6724_v20 = vpack.c.bf16 %v1758_v13, %v1754_v63  ;;  %v6076_v59 = vld [vmem:[#allocation7 + $0x544] ss:$12 sps:$4 sm:$0xff]   ;;  %v6074_v61 = vld [vmem:[#allocation7 + $0x540] ss:$12 sps:$4 sm:$0xff]   ;;  %v6078_v62 = vld [vmem:[#allocation7 + $0x8] ss:$12 sps:$4 sm:$0xff]  }
 0x1d4   :  { %v1761_v21 = vpack.c.bf16 %v1757_v17, %v1753_v14  ;;  %v1763_v22 = vpack.c.bf16 %v1759_v18, %v1755_v15  ;;  %v6081_v63 = vld [vmem:[#allocation7 + $0x55c] ss:$12 sps:$4 sm:$0xff]   ;;  %v6082_v0 = vld [vmem:[#allocation7 + $0xe0] ss:$12 sps:$4 sm:$0xff]   ;;  %v6079_v1 = vld [vmem:[#allocation7 + $0x558] ss:$12 sps:$4 sm:$0xff]  }
 0x1d5   :  { %v6083_v2 = vld [vmem:[#allocation7 + $0x20] ss:$12 sps:$4 sm:$0xff]   ;;  %v6087_v4 = vld [vmem:[#allocation7 + $0xf8] ss:$12 sps:$4 sm:$0xff]   ;;  %v6084_v5 = vld [vmem:[#allocation7 + $0x570] ss:$12 sps:$4 sm:$0xff]  }
 0x1d6   :  { %2436 = vmatprep.mubr.bf16.mxu0 %v1761_v21  ;;  %2522 = vmatprep.mubr.bf16.mxu1 %v1761_v21  ;;  %v6086_v3 = vld [vmem:[#allocation7 + $0x574] ss:$12 sps:$4 sm:$0xff]   ;;  %v6088_v6 = vld [vmem:[#allocation7 + $0x38] ss:$12 sps:$4 sm:$0xff]   ;;  %v6092_v13 = vld [vmem:[#allocation7 + $0x110] ss:$12 sps:$4 sm:$0xff]  }
 0x1d7   :  { %2437 = vmatmul.mubr.bf16.vlgmr.msra.gmra.mrb[8].mxu0 %v1760_v19  ;;  %2523 = vmatmul.mubr.bf16.vlgmr.msra.gmra.mrb[8].mxu1 %v1760_v19  ;;  %v6091_v7 = vld [vmem:[#allocation7 + $0x58c] ss:$12 sps:$4 sm:$0xff]   ;;  %v6089_v14 = vld [vmem:[#allocation7 + $0x588] ss:$12 sps:$4 sm:$0xff]   ;;  %v6093_v15 = vld [vmem:[#allocation7 + $0x50] ss:$12 sps:$4 sm:$0xff]  }
 0x1d8   :  { %2448 = vmatpush1.bf16.msra.mxu0 %v6034_v23  ;;  %5494 = vmatpush3.bf16.msra.mxu1 %v6038_v24  ;;  %v6096_v17 = vld [vmem:[#allocation7 + $0x5a4] ss:$12 sps:$4 sm:$0xff]   ;;  %v6097_v18 = vld [vmem:[#allocation7 + $0x128] ss:$12 sps:$4 sm:$0xff]   ;;  %v6094_v19 = vld [vmem:[#allocation7 + $0x5a0] ss:$12 sps:$4 sm:$0xff]  }
 0x1d9   :  { %2479 = vmatprep.mubr.bf16.mxu0 %v1763_v22  ;;  %2563 = vmatprep.mubr.bf16.mxu1 %v1763_v22  ;;  %v6098_v21 = vld [vmem:[#allocation7 + $0x68] ss:$12 sps:$4 sm:$0xff]   ;;  %v6102_v23 = vld [vmem:[#allocation7 + $0x140] ss:$12 sps:$4 sm:$0xff]   ;;  %v6099_v24 = vld [vmem:[#allocation7 + $0x5b8] ss:$12 sps:$4 sm:$0xff]  }
 0x1da   :  { %2449 = vmatprep.subr.bf16.mxu0 %v6041_v25  ;;  %5495 = vmatprep.subr.bf16.mxu1 %v6042_v26  ;;  %v6101_v22 = vld [vmem:[#allocation7 + $0x5bc] ss:$12 sps:$4 sm:$0xff]   ;;  %v6103_v25 = vld [vmem:[#allocation7 + $0x80] ss:$12 sps:$4 sm:$0xff]  }
 0x1db   :  { %v6106_v26 = vld [vmem:[#allocation7 + $0x5d4] ss:$12 sps:$4 sm:$0xff]  }
 0x1dc   :  { %2450 = vmatpush1.bf16.msra.mxu0 %v6039_v27  ;;  %5496 = vmatpush3.bf16.msra.mxu1 %v6043_v28  ;;  %v6107_v27 = vld [vmem:[#allocation7 + $0x158] ss:$12 sps:$4 sm:$0xff]   ;;  %v6104_v28 = vld [vmem:[#allocation7 + $0x5d0] ss:$12 sps:$4 sm:$0xff]  }
 0x1dd   :  { %2451 = vmatprep.subr.bf16.mxu0 %v6046_v29  ;;  %5497 = vmatprep.subr.bf16.mxu1 %v6047_v30  ;;  %v6108_v29 = vld [vmem:[#allocation7 + $0x98] ss:$12 sps:$4 sm:$0xff]  }
 0x1de   :  { %v6111_v30 = vld [vmem:[#allocation7 + $0x5ec] ss:$12 sps:$4 sm:$0xff]  }
 0x1e0   :  { %2452 = vmatpush1.bf16.msra.mxu0 %v6044_v31  ;;  %5498 = vmatpush3.bf16.msra.mxu1 %v6048_v32  ;;  %v6112_v31 = vld [vmem:[#allocation7 + $0x170] ss:$12 sps:$4 sm:$0xff]   ;;  %v6109_v32 = vld [vmem:[#allocation7 + $0x5e8] ss:$12 sps:$4 sm:$0xff]  }
 0x1e1   :  { %2453 = vmatprep.subr.bf16.mxu0 %v6051_v33  ;;  %5499 = vmatprep.subr.bf16.mxu1 %v6052_v34  ;;  %v6113_v33 = vld [vmem:[#allocation7 + $0xb0] ss:$12 sps:$4 sm:$0xff]  }
 0x1e2   :  { %v6116_v34 = vld [vmem:[#allocation7 + $0x4] ss:$12 sps:$4 sm:$0xff]  }
 0x1e4   :  { %2454 = vmatpush1.bf16.msra.mxu0 %v6049_v35  ;;  %5500 = vmatpush3.bf16.msra.mxu1 %v6053_v36  ;;  %v6117_v35 = vld [vmem:[#allocation7 + $0x248] ss:$12 sps:$4 sm:$0xff]   ;;  %v6114_v36 = vld [vmem:[#allocation7] ss:$12 sps:$4 sm:$0xff]  }
 0x1e5   :  { %2455 = vmatprep.subr.bf16.mxu0 %v6056_v37  ;;  %5501 = vmatprep.subr.bf16.mxu1 %v6057_v38  ;;  %v6118_v37 = vld [vmem:[#allocation7 + $0x188] ss:$12 sps:$4 sm:$0xff]  }
 0x1e6   :  { %v6121_v38 = vld [vmem:[#allocation7 + $0x1c] ss:$12 sps:$4 sm:$0xff]  }
 0x1e8   :  { %2456 = vmatpush1.bf16.msra.mxu0 %v6054_v39  ;;  %5502 = vmatpush3.bf16.msra.mxu1 %v6058_v40  ;;  %v6122_v39 = vld [vmem:[#allocation7 + $0x260] ss:$12 sps:$4 sm:$0xff]   ;;  %v6119_v40 = vld [vmem:[#allocation7 + $0x18] ss:$12 sps:$4 sm:$0xff]  }
 0x1e9   :  { %2457 = vmatprep.subr.bf16.mxu0 %v6061_v41  ;;  %5503 = vmatprep.subr.bf16.mxu1 %v6062_v47  ;;  %v6123_v41 = vld [vmem:[#allocation7 + $0x1a0] ss:$12 sps:$4 sm:$0xff]  }
 0x1ea   :  { %v6126_v47 = vld [vmem:[#allocation7 + $0x34] ss:$12 sps:$4 sm:$0xff]  }
 0x1ec   :  { %2458 = vmatpush1.bf16.msra.mxu0 %v6059_v48  ;;  %5504 = vmatpush3.bf16.msra.mxu1 %v6063_v49  ;;  %v6127_v48 = vld [vmem:[#allocation7 + $0x278] ss:$12 sps:$4 sm:$0xff]   ;;  %v6124_v49 = vld [vmem:[#allocation7 + $0x30] ss:$12 sps:$4 sm:$0xff]  }
 0x1ed   :  { %2459 = vmatprep.subr.bf16.mxu0 %v6066_v51  ;;  %5505 = vmatprep.subr.bf16.mxu1 %v6067_v52  ;;  %v6128_v51 = vld [vmem:[#allocation7 + $0x1b8] ss:$12 sps:$4 sm:$0xff]   ;;  %v6132_v52 = vld [vmem:[#allocation7 + $0x290] ss:$12 sps:$4 sm:$0xff]  }
 0x1f0   :  { %2460 = vmatpush1.bf16.msra.mxu0 %v6064_v53  ;;  %5506 = vmatpush3.bf16.msra.mxu1 %v6068_v54  ;;  %v6129_v53 = vld [vmem:[#allocation7 + $0x48] ss:$12 sps:$4 sm:$0xff]   ;;  %v6136_v54 = vld [vmem:[#allocation7 + $0x64] ss:$12 sps:$4 sm:$0xff]  }
 0x1f1   :  { %2461 = vmatprep.subr.bf16.mxu0 %v6071_v55  ;;  %5507 = vmatprep.subr.bf16.mxu1 %v6072_v56  ;;  %v6137_v55 = vld [vmem:[#allocation7 + $0x2a8] ss:$12 sps:$4 sm:$0xff]   ;;  %v6134_v56 = vld [vmem:[#allocation7 + $0x60] ss:$12 sps:$4 sm:$0xff]  }
 0x1f4   :  { %2462 = vmatpush1.bf16.msra.mxu0 %v6069_v57  ;;  %5508 = vmatpush3.bf16.msra.mxu1 %v6073_v58  ;;  %v6138_v57 = vld [vmem:[#allocation7 + $0x1e8] ss:$12 sps:$4 sm:$0xff]  }
 0x1f5   :  { %2463 = vmatprep.subr.bf16.mxu0 %v6076_v59  ;;  %5515 = vmatprep.subr.bf16.mxu1 %v6077_v60  ;;  %v6141_v58 = vld [vmem:[#allocation7 + $0x7c] ss:$12 sps:$4 sm:$0xff]   ;;  %v6142_v59 = vld [vmem:[#allocation7 + $0x2c0] ss:$12 sps:$4 sm:$0xff]   ;;  %v6139_v60 = vld [vmem:[#allocation7 + $0x78] ss:$12 sps:$4 sm:$0xff]  }
 0x1f7   :  { %2564 = vmatmul.mubr.bf16.vlgmr.msra.gmra.mrb[12].mxu1 %v6724_v20 }
 0x1f8   :  { %2464 = vmatpush1.bf16.msra.mxu0 %v6074_v61  ;;  %5516 = vmatpush3.bf16.msra.mxu1 %v6078_v62  ;;  %v6143_v61 = vld [vmem:[#allocation7 + $0x200] ss:$12 sps:$4 sm:$0xff]  }
 0x1f9   :  { %3202 = vmatprep.mubr.bf16.mxu1 %v6713_v45  ;;  %2465 = vmatprep.subr.bf16.mxu0 %v6081_v63  ;;  %v6146_v62 = vld [vmem:[#allocation7 + $0x94] ss:$12 sps:$4 sm:$0xff]   ;;  %v6147_v63 = vld [vmem:[#allocation7 + $0x2d8] ss:$12 sps:$4 sm:$0xff]  }
 0x1fa   :  { %5517 = vmatprep.subr.bf16.mxu1 %v6082_v0  ;;  %v6144_v0 = vld [vmem:[#allocation7 + $0x90] ss:$12 sps:$4 sm:$0xff]  }
 0x1fc   :  { %2466 = vmatpush1.bf16.msra.mxu0 %v6079_v1  ;;  %5518 = vmatpush3.bf16.msra.mxu1 %v6083_v2  ;;  %v6148_v1 = vld [vmem:[#allocation7 + $0x218] ss:$12 sps:$4 sm:$0xff]  }
 0x1fd   :  { %2467 = vmatprep.subr.bf16.mxu0 %v6086_v3  ;;  %5519 = vmatprep.subr.bf16.mxu1 %v6087_v4  ;;  %v6151_v2 = vld [vmem:[#allocation7 + $0xac] ss:$12 sps:$4 sm:$0xff]   ;;  %v6152_v3 = vld [vmem:[#allocation7 + $0x2f0] ss:$12 sps:$4 sm:$0xff]   ;;  %v6149_v4 = vld [vmem:[#allocation7 + $0xa8] ss:$12 sps:$4 sm:$0xff]  }
 0x200   :  { %2468 = vmatpush1.bf16.msra.mxu0 %v6084_v5  ;;  %5520 = vmatpush3.bf16.msra.mxu1 %v6088_v6  ;;  %v6153_v5 = vld [vmem:[#allocation7 + $0x230] ss:$12 sps:$4 sm:$0xff]  }
 0x201   :  { %2469 = vmatprep.subr.bf16.mxu0 %v6091_v7  ;;  %5521 = vmatprep.subr.bf16.mxu1 %v6092_v13  ;;  %v6156_v6 = vld [vmem:[#allocation7 + $0xc4] ss:$12 sps:$4 sm:$0xff]   ;;  %v6154_v13 = vld [vmem:[#allocation7 + $0xc0] ss:$12 sps:$4 sm:$0xff]  }
 0x202   :  { %v6159_v7 = vld [vmem:[#allocation5 + $0x24] ss:$48 sps:$4 sm:$0xff]  }
 0x204   :  { %2470 = vmatpush1.bf16.msra.mxu0 %v6089_v14  ;;  %5522 = vmatpush3.bf16.msra.mxu1 %v6093_v15  ;;  %v6157_v14 = vld [vmem:[#allocation5 + $0x20] ss:$48 sps:$4 sm:$0xff]   ;;  %v6162_v15 = vld [vmem:[#allocation7 + $0xdc] ss:$12 sps:$4 sm:$0xff]  }
 0x205   :  { %2471 = vmatprep.subr.bf16.mxu0 %v6096_v17  ;;  %5523 = vmatprep.subr.bf16.mxu1 %v6097_v18  ;;  %v6165_v17 = vld [vmem:[#allocation5 + $0x84] ss:$48 sps:$4 sm:$0xff]  }
 0x206   :  { %v6160_v18 = vld [vmem:[#allocation7 + $0xd8] ss:$12 sps:$4 sm:$0xff]  }
 0x208   :  { %2472 = vmatpush1.bf16.msra.mxu0 %v6094_v19  ;;  %5524 = vmatpush3.bf16.msra.mxu1 %v6098_v21  ;;  %v6163_v19 = vld [vmem:[#allocation5 + $0x80] ss:$48 sps:$4 sm:$0xff]  }
 0x209   :  { %2473 = vmatprep.subr.bf16.mxu0 %v6101_v22  ;;  %5525 = vmatprep.subr.bf16.mxu1 %v6102_v23  ;;  %v6168_v21 = vld [vmem:[#allocation7 + $0xf4] ss:$12 sps:$4 sm:$0xff]   ;;  %v6166_v23 = vld [vmem:[#allocation7 + $0xf0] ss:$12 sps:$4 sm:$0xff]  }
 0x20a   :  { %v6171_v22 = vld [vmem:[#allocation5 + $0xe4] ss:$48 sps:$4 sm:$0xff]  }
 0x20c   :  { %2474 = vmatpush1.bf16.msra.mxu0 %v6099_v24  ;;  %5526 = vmatpush3.bf16.msra.mxu1 %v6103_v25  ;;  %v6169_v24 = vld [vmem:[#allocation5 + $0xe0] ss:$48 sps:$4 sm:$0xff]   ;;  %v6174_v25 = vld [vmem:[#allocation7 + $0x10c] ss:$12 sps:$4 sm:$0xff]  }
 0x20d   :  { %2475 = vmatprep.subr.bf16.mxu0 %v6106_v26  ;;  %5527 = vmatprep.subr.bf16.mxu1 %v6107_v27  ;;  %v6177_v26 = vld [vmem:[#allocation5 + $0x144] ss:$48 sps:$4 sm:$0xff]  }
 0x20e   :  { %v6172_v27 = vld [vmem:[#allocation7 + $0x108] ss:$12 sps:$4 sm:$0xff]  }
 0x210   :  { %2476 = vmatpush1.bf16.msra.mxu0 %v6104_v28  ;;  %5528 = vmatpush3.bf16.msra.mxu1 %v6108_v29  ;;  %v6175_v28 = vld [vmem:[#allocation5 + $0x140] ss:$48 sps:$4 sm:$0xff]  }
 0x211   :  { %2477 = vmatprep.subr.bf16.mxu0 %v6111_v30  ;;  %5529 = vmatprep.subr.bf16.mxu1 %v6112_v31  ;;  %v6180_v29 = vld [vmem:[#allocation7 + $0x124] ss:$12 sps:$4 sm:$0xff]   ;;  %v6178_v31 = vld [vmem:[#allocation7 + $0x120] ss:$12 sps:$4 sm:$0xff]  }
 0x212   :  { %v6183_v30 = vld [vmem:[#allocation5 + $0x1a4] ss:$48 sps:$4 sm:$0xff]  }
 0x214   :  { %2478 = vmatpush1.bf16.msra.mxu0 %v6109_v32  ;;  %5530 = vmatpush3.bf16.msra.mxu1 %v6113_v33  ;;  %v6181_v32 = vld [vmem:[#allocation5 + $0x1a0] ss:$48 sps:$4 sm:$0xff]   ;;  %v6186_v33 = vld [vmem:[#allocation7 + $0x13c] ss:$12 sps:$4 sm:$0xff]  }
 0x215   :  { %3084 = vmatprep.subr.bf16.mxu0 %v6116_v34  ;;  %5537 = vmatprep.subr.bf16.mxu1 %v6117_v35  ;;  %v6189_v34 = vld [vmem:[#allocation5 + $0x204] ss:$48 sps:$4 sm:$0xff]  }
 0x216   :  { %v6184_v35 = vld [vmem:[#allocation7 + $0x138] ss:$12 sps:$4 sm:$0xff]  }
 0x217   :  { %2480 = vmatmul.mubr.bf16.vlgmr.msra.gmra.mrb[8].mxu0 %v6724_v20  ;;  %3203 = vmatmul.mubr.bf16.vlgmr.msra.gmra.mrb[16].mxu1 %v6709_v42  ;;  %v6131_v20 = vld [vmem:[#allocation7 + $0x4c] ss:$12 sps:$4 sm:$0xff]  }
 0x218   :  { %3085 = vmatpush1.bf16.msra.mxu0 %v6114_v36  ;;  %3116 = vmatprep.mubr.bf16.mxu0 %v6713_v45  ;;  %v6133_v45 = vld [vmem:[#allocation7 + $0x1d0] ss:$12 sps:$4 sm:$0xff]  }
 0x219   :  { %5538 = vmatpush3.bf16.msra.mxu1 %v6118_v37  ;;  %3243 = vmatprep.mubr.bf16.mxu1 %v6715_v46  ;;  %v6187_v36 = vld [vmem:[#allocation5 + $0x200] ss:$48 sps:$4 sm:$0xff]  }
 0x21a   :  { %3086 = vmatprep.subr.bf16.mxu0 %v6121_v38  ;;  %5539 = vmatprep.subr.bf16.mxu1 %v6122_v39  ;;  %v6192_v37 = vld [vmem:[#allocation7 + $0x154] ss:$12 sps:$4 sm:$0xff]   ;;  %v6190_v39 = vld [vmem:[#allocation7 + $0x150] ss:$12 sps:$4 sm:$0xff]  }
 0x21b   :  { %v6195_v38 = vld [vmem:[#allocation5 + $0x264] ss:$48 sps:$4 sm:$0xff]  }
 0x21c   :  { %3087 = vmatpush1.bf16.msra.mxu0 %v6119_v40  ;;  %v6193_v40 = vld [vmem:[#allocation5 + $0x260] ss:$48 sps:$4 sm:$0xff]  }
 0x21d   :  { %5540 = vmatpush3.bf16.msra.mxu1 %v6123_v41  ;;  %3088 = vmatprep.subr.bf16.mxu0 %v6126_v47  ;;  %v6198_v41 = vld [vmem:[#allocation7 + $0x16c] ss:$12 sps:$4 sm:$0xff]   ;;  %v6201_v47 = vld [vmem:[#allocation5 + $0x2c4] ss:$48 sps:$4 sm:$0xff]  }
 0x21e   :  { %5541 = vmatprep.subr.bf16.mxu1 %v6127_v48  ;;  %v6196_v48 = vld [vmem:[#allocation7 + $0x168] ss:$12 sps:$4 sm:$0xff]  }
 0x220   :  { %3089 = vmatpush1.bf16.msra.mxu0 %v6124_v49  ;;  %v6199_v49 = vld [vmem:[#allocation5 + $0x2c0] ss:$48 sps:$4 sm:$0xff]  }
 0x221   :  { %5542 = vmatpush3.bf16.msra.mxu1 %v6128_v51  ;;  %3090 = vmatprep.subr.bf16.mxu0 %v6131_v20  ;;  %v6204_v51 = vld [vmem:[#allocation7 + $0x184] ss:$12 sps:$4 sm:$0xff]  }
 0x222   :  { %5543 = vmatprep.subr.bf16.mxu1 %v6132_v52  ;;  %v6207_v20 = vld [vmem:[#allocation5 + $0x324] ss:$48 sps:$4 sm:$0xff]   ;;  %v6202_v52 = vld [vmem:[#allocation7 + $0x180] ss:$12 sps:$4 sm:$0xff]  }
 0x224   :  { %3091 = vmatpush1.bf16.msra.mxu0 %v6129_v53  ;;  %v6205_v53 = vld [vmem:[#allocation5 + $0x320] ss:$48 sps:$4 sm:$0xff]  }
 0x225   :  { %5544 = vmatpush3.bf16.msra.mxu1 %v6133_v45  ;;  %3092 = vmatprep.subr.bf16.mxu0 %v6136_v54  ;;  %v6210_v45 = vld [vmem:[#allocation7 + $0x19c] ss:$12 sps:$4 sm:$0xff]   ;;  %v6213_v54 = vld [vmem:[#allocation5 + $0x384] ss:$48 sps:$4 sm:$0xff]  }
 0x226   :  { %5545 = vmatprep.subr.bf16.mxu1 %v6137_v55  ;;  %v6208_v55 = vld [vmem:[#allocation7 + $0x198] ss:$12 sps:$4 sm:$0xff]  }
 0x228   :  { %3093 = vmatpush1.bf16.msra.mxu0 %v6134_v56  ;;  %v6211_v56 = vld [vmem:[#allocation5 + $0x380] ss:$48 sps:$4 sm:$0xff]  }
 0x229   :  { %5546 = vmatpush3.bf16.msra.mxu1 %v6138_v57  ;;  %3094 = vmatprep.subr.bf16.mxu0 %v6141_v58  ;;  %v6216_v57 = vld [vmem:[#allocation7 + $0x1b4] ss:$12 sps:$4 sm:$0xff]  }
 0x22a   :  { %5547 = vmatprep.subr.bf16.mxu1 %v6142_v59  ;;  %v6219_v58 = vld [vmem:[#allocation5 + $0x3e4] ss:$48 sps:$4 sm:$0xff]   ;;  %v6214_v59 = vld [vmem:[#allocation7 + $0x1b0] ss:$12 sps:$4 sm:$0xff]  }
 0x22c   :  { %3095 = vmatpush1.bf16.msra.mxu0 %v6139_v60  ;;  %v6217_v60 = vld [vmem:[#allocation5 + $0x3e0] ss:$48 sps:$4 sm:$0xff]  }
 0x22d   :  { %5548 = vmatpush3.bf16.msra.mxu1 %v6143_v61  ;;  %3096 = vmatprep.subr.bf16.mxu0 %v6146_v62  ;;  %v6222_v61 = vld [vmem:[#allocation7 + $0x1cc] ss:$12 sps:$4 sm:$0xff]   ;;  %v6225_v62 = vld [vmem:[#allocation5 + $0x444] ss:$48 sps:$4 sm:$0xff]  }
 0x22e   :  { %5549 = vmatprep.subr.bf16.mxu1 %v6147_v63  ;;  %v6228_v63 = vld [vmem:[#allocation7 + $0x1e4] ss:$12 sps:$4 sm:$0xff]  }
 0x230   :  { %3097 = vmatpush1.bf16.msra.mxu0 %v6144_v0  ;;  %v6231_v0 = vld [vmem:[#allocation5 + $0x4a4] ss:$48 sps:$4 sm:$0xff]  }
 0x231   :  { %5550 = vmatpush3.bf16.msra.mxu1 %v6148_v1  ;;  %3098 = vmatprep.subr.bf16.mxu0 %v6151_v2  ;;  %v6226_v1 = vld [vmem:[#allocation7 + $0x1e0] ss:$12 sps:$4 sm:$0xff]  }
 0x232   :  { %5551 = vmatprep.subr.bf16.mxu1 %v6152_v3  ;;  %v6229_v2 = vld [vmem:[#allocation5 + $0x4a0] ss:$48 sps:$4 sm:$0xff]   ;;  %v6234_v3 = vld [vmem:[#allocation7 + $0x1fc] ss:$12 sps:$4 sm:$0xff]  }
 0x234   :  { %3099 = vmatpush1.bf16.msra.mxu0 %v6149_v4  ;;  %v6237_v4 = vld [vmem:[#allocation5 + $0x504] ss:$48 sps:$4 sm:$0xff]  }
 0x235   :  { %5552 = vmatpush3.bf16.msra.mxu1 %v6153_v5  ;;  %3100 = vmatprep.subr.bf16.mxu0 %v6156_v6  ;;  %v6232_v5 = vld [vmem:[#allocation7 + $0x1f8] ss:$12 sps:$4 sm:$0xff]   ;;  %v6235_v6 = vld [vmem:[#allocation5 + $0x500] ss:$48 sps:$4 sm:$0xff]  }
 0x236   :  { %3850 = vmatprep.subr.bf16.mxu1 %v6159_v7  ;;  %v6240_v7 = vld [vmem:[#allocation7 + $0x214] ss:$12 sps:$4 sm:$0xff]  }
 0x238   :  { %3244 = vmatmul.mubr.bf16.vlgmr.msra.gmra.mrb[20].mxu1 %v6711_v44  ;;  %3101 = vmatpush1.bf16.msra.mxu0 %v6154_v13  ;;  %v6243_v13 = vld [vmem:[#allocation5 + $0x564] ss:$48 sps:$4 sm:$0xff]  }
 0x239   :  { %3851 = vmatpush1.bf16.msra.mxu1 %v6157_v14  ;;  %3102 = vmatprep.subr.bf16.mxu0 %v6162_v15  ;;  %v6238_v14 = vld [vmem:[#allocation7 + $0x210] ss:$12 sps:$4 sm:$0xff]  }
 0x23a   :  { %3852 = vmatprep.subr.bf16.mxu1 %v6165_v17  ;;  %3882 = vmatprep.mubr.bf16.mxu1 %v6672_v50  ;;  %v6241_v15 = vld [vmem:[#allocation5 + $0x560] ss:$48 sps:$4 sm:$0xff]   ;;  %v6246_v17 = vld [vmem:[#allocation7 + $0x22c] ss:$12 sps:$4 sm:$0xff]  }
 0x23c   :  { %3103 = vmatpush1.bf16.msra.mxu0 %v6160_v18  ;;  %v6249_v18 = vld [vmem:[#allocation5 + $0x5c4] ss:$48 sps:$4 sm:$0xff]  }
 0x23d   :  { %3853 = vmatpush1.bf16.msra.mxu1 %v6163_v19  ;;  %3104 = vmatprep.subr.bf16.mxu0 %v6168_v21  ;;  %v6244_v19 = vld [vmem:[#allocation7 + $0x228] ss:$12 sps:$4 sm:$0xff]   ;;  %v6247_v21 = vld [vmem:[#allocation5 + $0x5c0] ss:$48 sps:$4 sm:$0xff]  }
 0x23e   :  { %3854 = vmatprep.subr.bf16.mxu1 %v6171_v22  ;;  %v6252_v22 = vld [vmem:[#allocation7 + $0x244] ss:$12 sps:$4 sm:$0xff]  }
 0x240   :  { %3105 = vmatpush1.bf16.msra.mxu0 %v6166_v23  ;;  %v6255_v23 = vld [vmem:[#allocation5 + $0x624] ss:$48 sps:$4 sm:$0xff]  }
 0x241   :  { %3855 = vmatpush1.bf16.msra.mxu1 %v6169_v24  ;;  %3106 = vmatprep.subr.bf16.mxu0 %v6174_v25  ;;  %v6250_v24 = vld [vmem:[#allocation7 + $0x240] ss:$12 sps:$4 sm:$0xff]  }
 0x242   :  { %3856 = vmatprep.subr.bf16.mxu1 %v6177_v26  ;;  %v6253_v25 = vld [vmem:[#allocation5 + $0x620] ss:$48 sps:$4 sm:$0xff]   ;;  %v6258_v26 = vld [vmem:[#allocation7 + $0x25c] ss:$12 sps:$4 sm:$0xff]  }
 0x244   :  { %3107 = vmatpush1.bf16.msra.mxu0 %v6172_v27  ;;  %v6261_v27 = vld [vmem:[#allocation5 + $0x684] ss:$48 sps:$4 sm:$0xff]  }
 0x245   :  { %3857 = vmatpush1.bf16.msra.mxu1 %v6175_v28  ;;  %3108 = vmatprep.subr.bf16.mxu0 %v6180_v29  ;;  %v6256_v28 = vld [vmem:[#allocation7 + $0x258] ss:$12 sps:$4 sm:$0xff]   ;;  %v6259_v29 = vld [vmem:[#allocation5 + $0x680] ss:$48 sps:$4 sm:$0xff]  }
 0x246   :  { %3858 = vmatprep.subr.bf16.mxu1 %v6183_v30  ;;  %v6264_v30 = vld [vmem:[#allocation7 + $0x274] ss:$12 sps:$4 sm:$0xff]  }
 0x248   :  { %3109 = vmatpush1.bf16.msra.mxu0 %v6178_v31  ;;  %v6267_v31 = vld [vmem:[#allocation5 + $0x6e4] ss:$48 sps:$4 sm:$0xff]  }
 0x249   :  { %3859 = vmatpush1.bf16.msra.mxu1 %v6181_v32  ;;  %3110 = vmatprep.subr.bf16.mxu0 %v6186_v33  ;;  %v6262_v32 = vld [vmem:[#allocation7 + $0x270] ss:$12 sps:$4 sm:$0xff]  }
 0x24a   :  { %3860 = vmatprep.subr.bf16.mxu1 %v6189_v34  ;;  %v6265_v33 = vld [vmem:[#allocation5 + $0x6e0] ss:$48 sps:$4 sm:$0xff]   ;;  %v6270_v34 = vld [vmem:[#allocation7 + $0x28c] ss:$12 sps:$4 sm:$0xff]  }
 0x24c   :  { %3111 = vmatpush1.bf16.msra.mxu0 %v6184_v35  ;;  %v6273_v35 = vld [vmem:[#allocation5 + $0x744] ss:$48 sps:$4 sm:$0xff]  }
 0x24d   :  { %3861 = vmatpush1.bf16.msra.mxu1 %v6187_v36  ;;  %3112 = vmatprep.subr.bf16.mxu0 %v6192_v37  ;;  %v6268_v36 = vld [vmem:[#allocation7 + $0x288] ss:$12 sps:$4 sm:$0xff]   ;;  %v6271_v37 = vld [vmem:[#allocation5 + $0x740] ss:$48 sps:$4 sm:$0xff]  }
 0x24e   :  { %3862 = vmatprep.subr.bf16.mxu1 %v6195_v38  ;;  %v6276_v38 = vld [vmem:[#allocation7 + $0x2a4] ss:$12 sps:$4 sm:$0xff]  }
 0x250   :  { %3113 = vmatpush1.bf16.msra.mxu0 %v6190_v39  ;;  %v6279_v39 = vld [vmem:[#allocation5 + $0x7a4] ss:$48 sps:$4 sm:$0xff]  }
 0x251   :  { %3863 = vmatpush1.bf16.msra.mxu1 %v6193_v40  ;;  %3114 = vmatprep.subr.bf16.mxu0 %v6198_v41  ;;  %v6274_v40 = vld [vmem:[#allocation7 + $0x2a0] ss:$12 sps:$4 sm:$0xff]  }
 0x252   :  { %3864 = vmatprep.subr.bf16.mxu1 %v6201_v47  ;;  %v6277_v41 = vld [vmem:[#allocation5 + $0x7a0] ss:$48 sps:$4 sm:$0xff]   ;;  %v6282_v47 = vld [vmem:[#allocation7 + $0x2bc] ss:$12 sps:$4 sm:$0xff]  }
 0x254   :  { %3115 = vmatpush1.bf16.msra.mxu0 %v6196_v48  ;;  %v6285_v48 = vld [vmem:[#allocation5 + $0x804] ss:$48 sps:$4 sm:$0xff]  }
 0x255   :  { %3865 = vmatpush1.bf16.msra.mxu1 %v6199_v49  ;;  %3127 = vmatprep.subr.bf16.mxu0 %v6204_v51  ;;  %v6280_v49 = vld [vmem:[#allocation7 + $0x2b8] ss:$12 sps:$4 sm:$0xff]   ;;  %v6283_v51 = vld [vmem:[#allocation5 + $0x800] ss:$48 sps:$4 sm:$0xff]  }
 0x256   :  { %3866 = vmatprep.subr.bf16.mxu1 %v6207_v20  ;;  %v6288_v20 = vld [vmem:[#allocation7 + $0x2d4] ss:$12 sps:$4 sm:$0xff]  }
 0x257   :  { %3117 = vmatmul.mubr.bf16.vlgmr.msra.gmra.mrb[8].mxu0 %v6709_v42  ;;  %v6220_v42 = vld [vmem:[#allocation7 + $0x1c8] ss:$12 sps:$4 sm:$0xff]  }
 0x258   :  { %3128 = vmatpush1.bf16.msra.mxu0 %v6202_v52  ;;  %3159 = vmatprep.mubr.bf16.mxu0 %v6715_v46  ;;  %v6223_v46 = vld [vmem:[#allocation5 + $0x440] ss:$48 sps:$4 sm:$0xff]   ;;  %v6291_v52 = vld [vmem:[#allocation5 + $0x864] ss:$48 sps:$4 sm:$0xff]  }
 0x259   :  { %3867 = vmatpush1.bf16.msra.mxu1 %v6205_v53  ;;  %3129 = vmatprep.subr.bf16.mxu0 %v6210_v45  ;;  %v6286_v53 = vld [vmem:[#allocation7 + $0x2d0] ss:$12 sps:$4 sm:$0xff]  }
 0x25a   :  { %3868 = vmatprep.subr.bf16.mxu1 %v6213_v54  ;;  %v6289_v45 = vld [vmem:[#allocation5 + $0x860] ss:$48 sps:$4 sm:$0xff]   ;;  %v6294_v54 = vld [vmem:[#allocation7 + $0x2ec] ss:$12 sps:$4 sm:$0xff]  }
 0x25c   :  { %3130 = vmatpush1.bf16.msra.mxu0 %v6208_v55  ;;  %v6297_v55 = vld [vmem:[#allocation5 + $0x8c4] ss:$48 sps:$4 sm:$0xff]  }
 0x25d   :  { %3869 = vmatpush1.bf16.msra.mxu1 %v6211_v56  ;;  %3131 = vmatprep.subr.bf16.mxu0 %v6216_v57  ;;  %v6292_v56 = vld [vmem:[#allocation7 + $0x2e8] ss:$12 sps:$4 sm:$0xff]   ;;  %v6295_v57 = vld [vmem:[#allocation5 + $0x8c0] ss:$48 sps:$4 sm:$0xff]  }
 0x25e   :  { %3870 = vmatprep.subr.bf16.mxu1 %v6219_v58  ;;  %v6372_v58 = vld [vmem:[#allocation7 + $0x604] ss:$12 sps:$4 sm:$0xff]  }
 0x260   :  { %3132 = vmatpush1.bf16.msra.mxu0 %v6214_v59  ;;  %v6300_v59 = vld [vmem:[#allocation5 + $0x2c] ss:$48 sps:$4 sm:$0xff]  }
 0x261   :  { %3871 = vmatpush1.bf16.msra.mxu1 %v6217_v60  ;;  %3133 = vmatprep.subr.bf16.mxu0 %v6222_v61  ;;  %v6370_v60 = vld [vmem:[#allocation7 + $0x600] ss:$12 sps:$4 sm:$0xff]   ;;  %v6298_v61 = vld [vmem:[#allocation5 + $0x28] ss:$48 sps:$4 sm:$0xff]  }
 0x262   :  { %3872 = vmatprep.subr.bf16.mxu1 %v6225_v62  ;;  %v6303_v62 = vld [vmem:[#allocation5 + $0x8c] ss:$48 sps:$4 sm:$0xff]  }
 0x264   :  { %3134 = vmatpush1.bf16.msra.mxu0 %v6220_v42  ;;  %v6375_v42 = vld [vmem:[#allocation7 + $0x61c] ss:$12 sps:$4 sm:$0xff]  }
 0x265   :  { %3873 = vmatpush1.bf16.msra.mxu1 %v6223_v46  ;;  %3135 = vmatprep.subr.bf16.mxu0 %v6228_v63  ;;  %v6373_v46 = vld [vmem:[#allocation7 + $0x618] ss:$12 sps:$4 sm:$0xff]  }
 0x266   :  { %3874 = vmatprep.subr.bf16.mxu1 %v6231_v0  ;;  %v6301_v63 = vld [vmem:[#allocation5 + $0x88] ss:$48 sps:$4 sm:$0xff]   ;;  %v6378_v0 = vld [vmem:[#allocation7 + $0x634] ss:$12 sps:$4 sm:$0xff]  }
 0x268   :  { %3136 = vmatpush1.bf16.msra.mxu0 %v6226_v1  ;;  %v6306_v1 = vld [vmem:[#allocation5 + $0xec] ss:$48 sps:$4 sm:$0xff]  }
 0x269   :  { %3875 = vmatpush1.bf16.msra.mxu1 %v6229_v2  ;;  %3137 = vmatprep.subr.bf16.mxu0 %v6234_v3  ;;  %v6376_v2 = vld [vmem:[#allocation7 + $0x630] ss:$12 sps:$4 sm:$0xff]   ;;  %v6304_v3 = vld [vmem:[#allocation5 + $0xe8] ss:$48 sps:$4 sm:$0xff]  }
 0x26a   :  { %3876 = vmatprep.subr.bf16.mxu1 %v6237_v4  ;;  %v6381_v4 = vld [vmem:[#allocation7 + $0x64c] ss:$12 sps:$4 sm:$0xff]  }
 0x26c   :  { %3138 = vmatpush1.bf16.msra.mxu0 %v6232_v5  ;;  %v6379_v5 = vld [vmem:[#allocation7 + $0x648] ss:$12 sps:$4 sm:$0xff]  }
 0x26d   :  { %3877 = vmatpush1.bf16.msra.mxu1 %v6235_v6  ;;  %3139 = vmatprep.subr.bf16.mxu0 %v6240_v7  ;;  %v6307_v6 = vld [vmem:[#allocation5 + $0x148] ss:$48 sps:$4 sm:$0xff]   ;;  %v6384_v7 = vld [vmem:[#allocation7 + $0x664] ss:$12 sps:$4 sm:$0xff]  }
 0x26e   :  { %3878 = vmatprep.subr.bf16.mxu1 %v6243_v13  ;;  %v6382_v13 = vld [vmem:[#allocation7 + $0x660] ss:$12 sps:$4 sm:$0xff]  }
 0x270   :  { %3140 = vmatpush1.bf16.msra.mxu0 %v6238_v14  ;;  %v6310_v14 = vld [vmem:[#allocation5 + $0x1a8] ss:$48 sps:$4 sm:$0xff]  }
 0x271   :  { %3879 = vmatpush1.bf16.msra.mxu1 %v6241_v15  ;;  %3141 = vmatprep.subr.bf16.mxu0 %v6246_v17  ;;  %v6387_v15 = vld [vmem:[#allocation7 + $0x67c] ss:$12 sps:$4 sm:$0xff]  }
 0x272   :  { %3880 = vmatprep.subr.bf16.mxu1 %v6249_v18  ;;  %v6315_v17 = vld [vmem:[#allocation5 + $0x20c] ss:$48 sps:$4 sm:$0xff]   ;;  %v6385_v18 = vld [vmem:[#allocation7 + $0x678] ss:$12 sps:$4 sm:$0xff]  }
 0x274   :  { %3142 = vmatpush1.bf16.msra.mxu0 %v6244_v19  ;;  %v6313_v19 = vld [vmem:[#allocation5 + $0x208] ss:$48 sps:$4 sm:$0xff]  }
 0x275   :  { %3881 = vmatpush1.bf16.msra.mxu1 %v6247_v21  ;;  %3143 = vmatprep.subr.bf16.mxu0 %v6252_v22  ;;  %v6390_v21 = vld [vmem:[#allocation7 + $0x694] ss:$12 sps:$4 sm:$0xff]  }
 0x276   :  { %3893 = vmatprep.subr.bf16.mxu1 %v6255_v23  ;;  %v6318_v23 = vld [vmem:[#allocation5 + $0x26c] ss:$48 sps:$4 sm:$0xff]  }
 0x278   :  { %3144 = vmatpush1.bf16.msra.mxu0 %v6250_v24  ;;  %3883 = vmatmul.mubr.bf16.vlgmr.msra.gmra.mrb[24].mxu1 %v6676_v8 }
 0x279   :  { %3894 = vmatpush1.bf16.msra.mxu1 %v6253_v25  ;;  %3145 = vmatprep.subr.bf16.mxu0 %v6258_v26 }
 0x27a   :  { %3895 = vmatprep.subr.bf16.mxu1 %v6261_v27  ;;  %3925 = vmatprep.mubr.bf16.mxu1 %v6601_v16  ;;  %v6388_v27 = vld [vmem:[#allocation7 + $0x690] ss:$12 sps:$4 sm:$0xff]  }
 0x27c   :  { %3146 = vmatpush1.bf16.msra.mxu0 %v6256_v28 }
 0x27d   :  { %3896 = vmatpush1.bf16.msra.mxu1 %v6259_v29  ;;  %3147 = vmatprep.subr.bf16.mxu0 %v6264_v30  ;;  %v6316_v29 = vld [vmem:[#allocation5 + $0x268] ss:$48 sps:$4 sm:$0xff]  }
 0x27e   :  { %3897 = vmatprep.subr.bf16.mxu1 %v6267_v31  ;;  %v6393_v30 = vld [vmem:[#allocation7 + $0x6ac] ss:$12 sps:$4 sm:$0xff]  }
 0x280   :  { %3148 = vmatpush1.bf16.msra.mxu0 %v6262_v32  ;;  %v6321_v32 = vld [vmem:[#allocation5 + $0x2cc] ss:$48 sps:$4 sm:$0xff]  }
 0x281   :  { %3898 = vmatpush1.bf16.msra.mxu1 %v6265_v33  ;;  %3149 = vmatprep.subr.bf16.mxu0 %v6270_v34  ;;  %v6391_v33 = vld [vmem:[#allocation7 + $0x6a8] ss:$12 sps:$4 sm:$0xff]  }
 0x282   :  { %3899 = vmatprep.subr.bf16.mxu1 %v6273_v35  ;;  %v6319_v34 = vld [vmem:[#allocation5 + $0x2c8] ss:$48 sps:$4 sm:$0xff]   ;;  %v6396_v35 = vld [vmem:[#allocation7 + $0x6c4] ss:$12 sps:$4 sm:$0xff]  }
 0x284   :  { %3150 = vmatpush1.bf16.msra.mxu0 %v6268_v36  ;;  %v6324_v36 = vld [vmem:[#allocation5 + $0x32c] ss:$48 sps:$4 sm:$0xff]  }
 0x285   :  { %3900 = vmatpush1.bf16.msra.mxu1 %v6271_v37  ;;  %3151 = vmatprep.subr.bf16.mxu0 %v6276_v38  ;;  %v6394_v37 = vld [vmem:[#allocation7 + $0x6c0] ss:$12 sps:$4 sm:$0xff]   ;;  %v6322_v38 = vld [vmem:[#allocation5 + $0x328] ss:$48 sps:$4 sm:$0xff]  }
 0x286   :  { %3901 = vmatprep.subr.bf16.mxu1 %v6279_v39  ;;  %v6401_v39 = vld [vmem:[#allocation7 + $0x6dc] ss:$12 sps:$4 sm:$0xff]  }
 0x288   :  { %3152 = vmatpush1.bf16.msra.mxu0 %v6274_v40  ;;  %v6327_v40 = vld [vmem:[#allocation5 + $0x38c] ss:$48 sps:$4 sm:$0xff]  }
 0x289   :  { %3902 = vmatpush1.bf16.msra.mxu1 %v6277_v41  ;;  %3153 = vmatprep.subr.bf16.mxu0 %v6282_v47  ;;  %v6399_v41 = vld [vmem:[#allocation7 + $0x6d8] ss:$12 sps:$4 sm:$0xff]  }
 0x28a   :  { %3903 = vmatprep.subr.bf16.mxu1 %v6285_v48  ;;  %v6325_v47 = vld [vmem:[#allocation5 + $0x388] ss:$48 sps:$4 sm:$0xff]   ;;  %v6406_v48 = vld [vmem:[#allocation7 + $0x6f4] ss:$12 sps:$4 sm:$0xff]  }
 0x28c   :  { %3154 = vmatpush1.bf16.msra.mxu0 %v6280_v49  ;;  %v6330_v49 = vld [vmem:[#allocation5 + $0x3ec] ss:$48 sps:$4 sm:$0xff]  }
 0x28d   :  { %3904 = vmatpush1.bf16.msra.mxu1 %v6283_v51  ;;  %3155 = vmatprep.subr.bf16.mxu0 %v6288_v20  ;;  %v6404_v51 = vld [vmem:[#allocation7 + $0x6f0] ss:$12 sps:$4 sm:$0xff]   ;;  %v6328_v20 = vld [vmem:[#allocation5 + $0x3e8] ss:$48 sps:$4 sm:$0xff]  }
 0x28e   :  { %3905 = vmatprep.subr.bf16.mxu1 %v6291_v52  ;;  %v6411_v52 = vld [vmem:[#allocation7 + $0x70c] ss:$12 sps:$4 sm:$0xff]  }
 0x290   :  { %3156 = vmatpush1.bf16.msra.mxu0 %v6286_v53  ;;  %v6333_v53 = vld [vmem:[#allocation5 + $0x44c] ss:$48 sps:$4 sm:$0xff]  }
 0x291   :  { %3906 = vmatpush1.bf16.msra.mxu1 %v6289_v45  ;;  %3157 = vmatprep.subr.bf16.mxu0 %v6294_v54  ;;  %v6409_v45 = vld [vmem:[#allocation7 + $0x708] ss:$12 sps:$4 sm:$0xff]  }
 0x292   :  { %3907 = vmatprep.subr.bf16.mxu1 %v6297_v55  ;;  %v6331_v54 = vld [vmem:[#allocation5 + $0x448] ss:$48 sps:$4 sm:$0xff]   ;;  %v6416_v55 = vld [vmem:[#allocation7 + $0x724] ss:$12 sps:$4 sm:$0xff]  }
 0x294   :  { %3158 = vmatpush1.bf16.msra.mxu0 %v6292_v56  ;;  %v6336_v56 = vld [vmem:[#allocation5 + $0x4ac] ss:$48 sps:$4 sm:$0xff]  }
 0x295   :  { %3908 = vmatpush1.bf16.msra.mxu1 %v6295_v57  ;;  %4674 = vmatprep.subr.bf16.mxu0 %v6372_v58  ;;  %v6414_v57 = vld [vmem:[#allocation7 + $0x720] ss:$12 sps:$4 sm:$0xff]   ;;  %v6334_v58 = vld [vmem:[#allocation5 + $0x4a8] ss:$48 sps:$4 sm:$0xff]  }
 0x296   :  { %3936 = vmatprep.subr.bf16.mxu1 %v6300_v59  ;;  %v6421_v59 = vld [vmem:[#allocation7 + $0x73c] ss:$12 sps:$4 sm:$0xff]  }
 0x297   :  { %3160 = vmatmul.mubr.bf16.vlgmr.msra.gmra.mrb[8].mxu0 %v6711_v44  ;;  %v6309_v44 = vld [vmem:[#allocation5 + $0x14c] ss:$48 sps:$4 sm:$0xff]  }
 0x298   :  { %3926 = vmatmul.mubr.bf16.vlgmr.msra.gmra.mrb[24].mxu1 %v6682_v43  ;;  %4675 = vmatpush1.bf16.msra.mxu0 %v6370_v60  ;;  %v6339_v60 = vld [vmem:[#allocation5 + $0x50c] ss:$48 sps:$4 sm:$0xff]  }
 0x299   :  { %3937 = vmatpush1.bf16.msra.mxu1 %v6298_v61  ;;  %3968 = vmatprep.mubr.bf16.mxu1 %v6672_v50  ;;  %v6312_v50 = vld [vmem:[#allocation5 + $0x1ac] ss:$48 sps:$4 sm:$0xff]   ;;  %v6419_v61 = vld [vmem:[#allocation7 + $0x738] ss:$12 sps:$4 sm:$0xff]  }
 0x29a   :  { %3938 = vmatprep.subr.bf16.mxu1 %v6303_v62  ;;  %4676 = vmatprep.subr.bf16.mxu0 %v6375_v42  ;;  %v6337_v62 = vld [vmem:[#allocation5 + $0x508] ss:$48 sps:$4 sm:$0xff]  }
 0x29c   :  { %4677 = vmatpush1.bf16.msra.mxu0 %v6373_v46  ;;  %v6342_v46 = vld [vmem:[#allocation5 + $0x56c] ss:$48 sps:$4 sm:$0xff]  }
 0x29d   :  { %3939 = vmatpush1.bf16.msra.mxu1 %v6301_v63  ;;  %4678 = vmatprep.subr.bf16.mxu0 %v6378_v0 }
 0x29e   :  { %3940 = vmatprep.subr.bf16.mxu1 %v6306_v1 }
 0x2a0   :  { %4679 = vmatpush1.bf16.msra.mxu0 %v6376_v2 }
 0x2a1   :  { %3941 = vmatpush1.bf16.msra.mxu1 %v6304_v3  ;;  %4680 = vmatprep.subr.bf16.mxu0 %v6381_v4  ;;  %v6340_v3 = vld [vmem:[#allocation5 + $0x568] ss:$48 sps:$4 sm:$0xff]  }
 0x2a2   :  { %3942 = vmatprep.subr.bf16.mxu1 %v6309_v44 }
 0x2a4   :  { %4681 = vmatpush1.bf16.msra.mxu0 %v6379_v5  ;;  %v6345_v5 = vld [vmem:[#allocation5 + $0x5cc] ss:$48 sps:$4 sm:$0xff]  }
 0x2a5   :  { %3943 = vmatpush1.bf16.msra.mxu1 %v6307_v6  ;;  %4682 = vmatprep.subr.bf16.mxu0 %v6384_v7  ;;  %v6343_v7 = vld [vmem:[#allocation5 + $0x5c8] ss:$48 sps:$4 sm:$0xff]  }
 0x2a6   :  { %3944 = vmatprep.subr.bf16.mxu1 %v6312_v50  ;;  %v6348_v50 = vld [vmem:[#allocation5 + $0x62c] ss:$48 sps:$4 sm:$0xff]  }
 0x2a8   :  { %4683 = vmatpush1.bf16.msra.mxu0 %v6382_v13  ;;  %v6346_v13 = vld [vmem:[#allocation5 + $0x628] ss:$48 sps:$4 sm:$0xff]  }
 0x2a9   :  { %3945 = vmatpush1.bf16.msra.mxu1 %v6310_v14  ;;  %4684 = vmatprep.subr.bf16.mxu0 %v6387_v15  ;;  %v6351_v14 = vld [vmem:[#allocation5 + $0x68c] ss:$48 sps:$4 sm:$0xff]   ;;  %v6349_v15 = vld [vmem:[#allocation5 + $0x688] ss:$48 sps:$4 sm:$0xff]  }
 0x2aa   :  { %v5487_v22 = vpop.f32.mrb[8].mxu1  ;;  %3946 = vmatprep.subr.bf16.mxu1 %v6315_v17  ;;  %v6354_v17 = vld [vmem:[#allocation5 + $0x6ec] ss:$48 sps:$4 sm:$0xff]  }
 0x2ab   :  { %v5488_v24 = vpop.f32.mrb[9].mxu1 }
 0x2ac   :  { %v6741_v25 = vadd.f32 %v5488_v24, %v5487_v22  ;;  %v5490_v26 = vpop.f32.mrb[10].mxu1  ;;  %4685 = vmatpush1.bf16.msra.mxu0 %v6385_v18  ;;  %v6352_v18 = vld [vmem:[#allocation5 + $0x6e8] ss:$48 sps:$4 sm:$0xff]   ;;  %v6360_v22 = vld [vmem:[#allocation5 + $0x7ac] ss:$48 sps:$4 sm:$0xff]  }
 0x2ad   :  { %3947 = vmatpush1.bf16.msra.mxu1 %v6313_v19  ;;  %v5491_v28 = vpop.f32.mrb[11].mxu1  ;;  %4686 = vmatprep.subr.bf16.mxu0 %v6390_v21  ;;  %v6357_v19 = vld [vmem:[#allocation5 + $0x74c] ss:$48 sps:$4 sm:$0xff]   ;;  %v6355_v21 = vld [vmem:[#allocation5 + $0x748] ss:$48 sps:$4 sm:$0xff]  }
 0x2ae   :  { %v6743_v31 = vadd.f32 %v5491_v28, %v5490_v26  ;;  %3948 = vmatprep.subr.bf16.mxu1 %v6318_v23  ;;  %v6358_v23 = vld [vmem:[#allocation5 + $0x7a8] ss:$48 sps:$4 sm:$0xff]   ;;  %v6363_v24 = vld [vmem:[#allocation5 + $0x80c] ss:$48 sps:$4 sm:$0xff]  }
 0x2af   :  { %v6366_v26 = vld [vmem:[#allocation5 + $0x86c] ss:$48 sps:$4 sm:$0xff]  }
 0x2b0   :  { %4687 = vmatpush1.bf16.msra.mxu0 %v6388_v27 }
 0x2b1   :  { %3949 = vmatpush1.bf16.msra.mxu1 %v6316_v29  ;;  %4688 = vmatprep.subr.bf16.mxu0 %v6393_v30  ;;  %v6426_v29 = vld [vmem:[#allocation7 + $0x754] ss:$12 sps:$4 sm:$0xff]  }
 0x2b2   :  { %3950 = vmatprep.subr.bf16.mxu1 %v6321_v32  ;;  %v6424_v32 = vld [vmem:[#allocation7 + $0x750] ss:$12 sps:$4 sm:$0xff]  }
 0x2b4   :  { %4689 = vmatpush1.bf16.msra.mxu0 %v6391_v33 }
 0x2b5   :  { %3951 = vmatpush1.bf16.msra.mxu1 %v6319_v34  ;;  %4690 = vmatprep.subr.bf16.mxu0 %v6396_v35  ;;  %v6369_v35 = vld [vmem:[#allocation5 + $0x8cc] ss:$48 sps:$4 sm:$0xff]  }
 0x2b6   :  { %3952 = vmatprep.subr.bf16.mxu1 %v6324_v36 }
 0x2b8   :  { %4691 = vmatpush1.bf16.msra.mxu0 %v6394_v37  ;;  %v6431_v37 = vld [vmem:[#allocation7 + $0x76c] ss:$12 sps:$4 sm:$0xff]  }
 0x2b9   :  { %3953 = vmatpush1.bf16.msra.mxu1 %v6322_v38  ;;  %4692 = vmatprep.subr.bf16.mxu0 %v6401_v39  ;;  %v6367_v38 = vld [vmem:[#allocation5 + $0x8c8] ss:$48 sps:$4 sm:$0xff]  }
 0x2ba   :  { %3954 = vmatprep.subr.bf16.mxu1 %v6327_v40  ;;  %v6429_v39 = vld [vmem:[#allocation7 + $0x768] ss:$12 sps:$4 sm:$0xff]  }
 0x2bb   :  { %v6397_v40 = vld [vmem:[#allocation7 + $0x6c8] ss:$12 sps:$4 sm:$0xff]  }
 0x2bc   :  { %4693 = vmatpush1.bf16.msra.mxu0 %v6399_v41  ;;  %v6398_v41 = vld [vmem:[#allocation7 + $0x608] ss:$12 sps:$4 sm:$0xff]  }
 0x2bd   :  { %3955 = vmatpush1.bf16.msra.mxu1 %v6325_v47  ;;  %4694 = vmatprep.subr.bf16.mxu0 %v6406_v48  ;;  %v6402_v47 = vld [vmem:[#allocation7 + $0x6e0] ss:$12 sps:$4 sm:$0xff]   ;;  %v6436_v48 = vld [vmem:[#allocation7 + $0x784] ss:$12 sps:$4 sm:$0xff]  }
 0x2be   :  { %3956 = vmatprep.subr.bf16.mxu1 %v6330_v49  ;;  %v6403_v49 = vld [vmem:[#allocation7 + $0x620] ss:$12 sps:$4 sm:$0xff]  }
 0x2c0   :  { %4695 = vmatpush1.bf16.msra.mxu0 %v6404_v51  ;;  %v6407_v51 = vld [vmem:[#allocation7 + $0x6f8] ss:$12 sps:$4 sm:$0xff]  }
 0x2c1   :  { %3957 = vmatpush1.bf16.msra.mxu1 %v6328_v20  ;;  %4696 = vmatprep.subr.bf16.mxu0 %v6411_v52  ;;  %v6408_v20 = vld [vmem:[#allocation7 + $0x638] ss:$12 sps:$4 sm:$0xff]   ;;  %v6412_v52 = vld [vmem:[#allocation7 + $0x710] ss:$12 sps:$4 sm:$0xff]  }
 0x2c2   :  { %3958 = vmatprep.subr.bf16.mxu1 %v6333_v53  ;;  %v6413_v53 = vld [vmem:[#allocation7 + $0x650] ss:$12 sps:$4 sm:$0xff]  }
 0x2c4   :  { %4697 = vmatpush1.bf16.msra.mxu0 %v6409_v45  ;;  %v6417_v45 = vld [vmem:[#allocation7 + $0x728] ss:$12 sps:$4 sm:$0xff]  }
 0x2c5   :  { %3959 = vmatpush1.bf16.msra.mxu1 %v6331_v54  ;;  %4698 = vmatprep.subr.bf16.mxu0 %v6416_v55  ;;  %v6418_v54 = vld [vmem:[#allocation7 + $0x668] ss:$12 sps:$4 sm:$0xff]   ;;  %v6422_v55 = vld [vmem:[#allocation7 + $0x740] ss:$12 sps:$4 sm:$0xff]  }
 0x2c6   :  { %3960 = vmatprep.subr.bf16.mxu1 %v6336_v56  ;;  %v6423_v56 = vld [vmem:[#allocation7 + $0x680] ss:$12 sps:$4 sm:$0xff]  }
 0x2c8   :  { %4699 = vmatpush1.bf16.msra.mxu0 %v6414_v57 }
 0x2c9   :  { %3961 = vmatpush1.bf16.msra.mxu1 %v6334_v58  ;;  %4700 = vmatprep.subr.bf16.mxu0 %v6421_v59 }
 0x2ca   :  { %v5509_v42 = vpop.f32.mrb[12].mxu1  ;;  %3962 = vmatprep.subr.bf16.mxu1 %v6339_v60 }
 0x2cb   :  { %v5510_v63 = vpop.f32.mrb[13].mxu1 }
 0x2cc   :  { %v5511_v0 = vadd.f32 %v5510_v63, %v5509_v42  ;;  %v5512_v1 = vpop.f32.mrb[14].mxu1  ;;  %4701 = vmatpush1.bf16.msra.mxu0 %v6419_v61  ;;  %v6428_v61 = vld [vmem:[#allocation7 + $0x698] ss:$12 sps:$4 sm:$0xff]   ;;  %v6432_v42 = vld [vmem:[#allocation7 + $0x770] ss:$12 sps:$4 sm:$0xff]  }
 0x2cd   :  { %3963 = vmatpush1.bf16.msra.mxu1 %v6337_v62  ;;  %v5513_v2 = vpop.f32.mrb[15].mxu1  ;;  %4702 = vmatprep.subr.bf16.mxu0 %v6426_v29  ;;  %v6442_v29 = vld [vmem:[#allocation7 + $0x7b4] ss:$12 sps:$4 sm:$0xff]  }
 0x2ce   :  { %v2566_v4 = vadd.f32 %v5511_v0, %v6741_v25  ;;  %v5514_v44 = vadd.f32 %v5513_v2, %v5512_v1  ;;  %3964 = vmatprep.subr.bf16.mxu1 %v6342_v46  ;;  %v6433_v1 = vld [vmem:[#allocation7 + $0x6b0] ss:$12 sps:$4 sm:$0xff]   ;;  %v6461_v2 = vld [vmem:[#allocation7 + $0x848] ss:$12 sps:$4 sm:$0xff]  }
 0x2d0   :  { %v2569_v6 = vadd.f32 %v5514_v44, %v6743_v31  ;;  %v6364_v31 = vld [vmem:[#allocation5 + $0x868] ss:$48 sps:$4 sm:$0xff]   ;;  %4703 = vmatpush1.bf16.msra.mxu0 %v6424_v32 }
 0x2d1   :  { %3965 = vmatpush1.bf16.msra.mxu1 %v6340_v3  ;;  %4704 = vmatprep.subr.bf16.mxu0 %v6431_v37  ;;  %v6757_v3 = vld [vmem:[%s6792_s2 + $0x8] sm:$0xf]  ;;  %v6448_v37 = vld [vmem:[#allocation7 + $0x7e4] ss:$12 sps:$4 sm:$0xff]  }
 0x2d2   :  { %3966 = vmatprep.subr.bf16.mxu1 %v6345_v5  ;;  %v3357_v44 = vrot.slane %v6757_v3, %v6701_v11  ;;  %v6472_v32 = vld [vmem:[#allocation7 + $0x7b8] ss:$12 sps:$4 sm:$0xff]  }
 0x2d4   :  { %4705 = vmatpush1.bf16.msra.mxu0 %v6429_v39  ;;  %v6446_v39 = vld [vmem:[#allocation7 + $0x7e0] ss:$12 sps:$4 sm:$0xff]  }
 0x2d5   :  { %3967 = vmatpush1.bf16.msra.mxu1 %v6343_v7  ;;  %4717 = vmatprep.subr.bf16.mxu0 %v6436_v48  ;;  %v6449_v48 = vld [vmem:[#allocation7 + $0x7f8] ss:$12 sps:$4 sm:$0xff]  }
 0x2d6   :  { %3979 = vmatprep.subr.bf16.mxu1 %v6348_v50 }
 0x2d8   :  { %3969 = vmatmul.mubr.bf16.vlgmr.msra.gmra.mrb[28].mxu1 %v6676_v8  ;;  %v6361_v8 = vld [vmem:[#allocation5 + $0x808] ss:$48 sps:$4 sm:$0xff]  }
 0x2d9   :  { %3980 = vmatpush1.bf16.msra.mxu1 %v6346_v13  ;;  %4011 = vmatprep.mubr.bf16.mxu1 %v6601_v16 }
 0x2da   :  { %3981 = vmatprep.subr.bf16.mxu1 %v6351_v14 }
 0x2dd   :  { %3982 = vmatpush1.bf16.msra.mxu1 %v6349_v15 }
 0x2de   :  { %3983 = vmatprep.subr.bf16.mxu1 %v6354_v17 }
 0x2e1   :  { %3984 = vmatpush1.bf16.msra.mxu1 %v6352_v18 }
 0x2e2   :  { %3985 = vmatprep.subr.bf16.mxu1 %v6357_v19 }
 0x2e5   :  { %3986 = vmatpush1.bf16.msra.mxu1 %v6355_v21 }
 0x2e6   :  { %3987 = vmatprep.subr.bf16.mxu1 %v6360_v22 }
 0x2e9   :  { %3988 = vmatpush1.bf16.msra.mxu1 %v6358_v23 }
 0x2ea   :  { %v5531_v25 = vpop.f32.mrb[16].mxu1  ;;  %3989 = vmatprep.subr.bf16.mxu1 %v6363_v24 }
 0x2eb   :  { %v5532_v16 = vpop.f32.mrb[17].mxu1 }
 0x2ec   :  { %v5533_v27 = vadd.f32 %v5532_v16, %v5531_v25  ;;  %v5534_v28 = vpop.f32.mrb[18].mxu1  ;;  %v6462_v25 = vld [vmem:[#allocation7 + $0x788] ss:$12 sps:$4 sm:$0xff]   ;;  %v6466_v16 = vld [vmem:[#allocation7 + $0x860] ss:$12 sps:$4 sm:$0xff]  }
 0x2ed   :  { %3990 = vmatpush1.bf16.msra.mxu1 %v6361_v8  ;;  %v5535_v30 = vpop.f32.mrb[19].mxu1  ;;  %v6434_v8 = vld [vmem:[#allocation7 + $0x780] ss:$12 sps:$4 sm:$0xff]  }
 0x2ee   :  { %v3205_v33 = vadd.f32 %v5533_v27, %v2566_v4  ;;  %v5536_v34 = vadd.f32 %v5535_v30, %v5534_v28  ;;  %3991 = vmatprep.subr.bf16.mxu1 %v6366_v26  ;;  %v3353_v4 = vrot.slane %v6757_v3, %v6697_v9  ;;  %v6439_v26 = vld [vmem:[#allocation7 + $0x79c] ss:$12 sps:$4 sm:$0xff]   ;;  %v6437_v27 = vld [vmem:[#allocation7 + $0x798] ss:$12 sps:$4 sm:$0xff]   ;;  %v6467_v28 = vld [vmem:[#allocation7 + $0x7a0] ss:$12 sps:$4 sm:$0xff]  }
 0x2ef   :  { %v6471_v30 = vld [vmem:[#allocation7 + $0x878] ss:$12 sps:$4 sm:$0xff]  }
 0x2f0   :  { %v3208_v36 = vadd.f32 %v5536_v34, %v2569_v6  ;;  %v6476_v34 = vld [vmem:[#allocation7 + $0x890] ss:$12 sps:$4 sm:$0xff]  }
 0x2f1   :  { %3992 = vmatpush1.bf16.msra.mxu1 %v6364_v31  ;;  %v6440_v31 = vld [vmem:[#allocation7 + $0x7b0] ss:$12 sps:$4 sm:$0xff]  }
 0x2f2   :  { %3993 = vmatprep.subr.bf16.mxu1 %v6369_v35  ;;  %v6443_v35 = vld [vmem:[#allocation7 + $0x7c8] ss:$12 sps:$4 sm:$0xff]  }
 0x2f5   :  { %3994 = vmatpush1.bf16.msra.mxu1 %v6367_v38  ;;  %v6481_v38 = vld [vmem:[#allocation7 + $0x8a8] ss:$12 sps:$4 sm:$0xff]  }
 0x2f6   :  { %5559 = vmatprep.subr.bf16.mxu1 %v6397_v40  ;;  %v6482_v40 = vld [vmem:[#allocation7 + $0x7e8] ss:$12 sps:$4 sm:$0xff]  }
 0x2f8   :  { %4012 = vmatmul.mubr.bf16.vlgmr.msra.gmra.mrb[28].mxu1 %v6682_v43  ;;  %v6427_v43 = vld [vmem:[#allocation7 + $0x758] ss:$12 sps:$4 sm:$0xff]  }
 0x2f9   :  { %5560 = vmatpush3.bf16.msra.mxu1 %v6398_v41  ;;  %v6451_v41 = vld [vmem:[#allocation7 + $0x7fc] ss:$12 sps:$4 sm:$0xff]  }
 0x2fa   :  { %5561 = vmatprep.subr.bf16.mxu1 %v6402_v47  ;;  %v6486_v47 = vld [vmem:[#allocation7 + $0x8c0] ss:$12 sps:$4 sm:$0xff]  }
 0x2fd   :  { %5562 = vmatpush3.bf16.msra.mxu1 %v6403_v49  ;;  %v6487_v49 = vld [vmem:[#allocation7 + $0x800] ss:$12 sps:$4 sm:$0xff]  }
 0x2fe   :  { %5563 = vmatprep.subr.bf16.mxu1 %v6407_v51  ;;  %v6454_v51 = vld [vmem:[#allocation7 + $0x814] ss:$12 sps:$4 sm:$0xff]  }
 0x301   :  { %5564 = vmatpush3.bf16.msra.mxu1 %v6408_v20  ;;  %v6491_v20 = vld [vmem:[#allocation7 + $0x8d8] ss:$12 sps:$4 sm:$0xff]  }
 0x302   :  { %5565 = vmatprep.subr.bf16.mxu1 %v6412_v52  ;;  %v6452_v52 = vld [vmem:[#allocation7 + $0x810] ss:$12 sps:$4 sm:$0xff]  }
 0x305   :  { %5566 = vmatpush3.bf16.msra.mxu1 %v6413_v53  ;;  %v6492_v53 = vld [vmem:[#allocation7 + $0x818] ss:$12 sps:$4 sm:$0xff]  }
 0x306   :  { %5567 = vmatprep.subr.bf16.mxu1 %v6417_v45  ;;  %v6457_v45 = vld [vmem:[#allocation7 + $0x82c] ss:$12 sps:$4 sm:$0xff]  }
 0x309   :  { %5568 = vmatpush3.bf16.msra.mxu1 %v6418_v54  ;;  %v6496_v54 = vld [vmem:[#allocation7 + $0x8f0] ss:$12 sps:$4 sm:$0xff]  }
 0x30a   :  { %5569 = vmatprep.subr.bf16.mxu1 %v6422_v55  ;;  %v6455_v55 = vld [vmem:[#allocation7 + $0x828] ss:$12 sps:$4 sm:$0xff]  }
 0x30b   :  { %v5553_v57 = vpop.f32.mrb[20].mxu1 }
 0x30c   :  { %v5554_v58 = vpop.f32.mrb[21].mxu1 }
 0x30d   :  { %v5555_v59 = vadd.f32 %v5554_v58, %v5553_v57  ;;  %v5556_v60 = vpop.f32.mrb[22].mxu1  ;;  %5570 = vmatpush3.bf16.msra.mxu1 %v6423_v56  ;;  %v6497_v56 = vld [vmem:[#allocation7 + $0x830] ss:$12 sps:$4 sm:$0xff]   ;;  %v6458_v57 = vld [vmem:[#allocation7 + $0x840] ss:$12 sps:$4 sm:$0xff]  }
 0x30e   :  { %v5557_v62 = vpop.f32.mrb[23].mxu1  ;;  %5571 = vmatprep.subr.bf16.mxu1 %v6427_v43  ;;  %v6460_v43 = vld [vmem:[#allocation7 + $0x844] ss:$12 sps:$4 sm:$0xff]   ;;  %v6465_v58 = vld [vmem:[#allocation7 + $0x85c] ss:$12 sps:$4 sm:$0xff]  }
 0x30f   :  { %v6750_v46 = vadd.f32 %v5555_v59, %v3205_v33  ;;  %v5558_v63 = vadd.f32 %v5557_v62, %v5556_v60  ;;  %v6445_v33 = vld [vmem:[#allocation7 + $0x7cc] ss:$12 sps:$4 sm:$0xff]   ;;  %v6470_v60 = vld [vmem:[#allocation7 + $0x874] ss:$12 sps:$4 sm:$0xff]  }
 0x310   :  { %v6463_v59 = vld [vmem:[#allocation7 + $0x858] ss:$12 sps:$4 sm:$0xff]  }
 0x311   :  { %v6752_v0 = vadd.f32 %v5558_v63, %v3208_v36  ;;  %5572 = vmatpush3.bf16.msra.mxu1 %v6428_v61  ;;  %v6477_v36 = vld [vmem:[#allocation7 + $0x7d0] ss:$12 sps:$4 sm:$0xff]   ;;  %v6475_v62 = vld [vmem:[#allocation7 + $0x88c] ss:$12 sps:$4 sm:$0xff]  }
 0x312   :  { %5573 = vmatprep.subr.bf16.mxu1 %v6432_v42  ;;  %v6468_v61 = vld [vmem:[#allocation7 + $0x870] ss:$12 sps:$4 sm:$0xff]   ;;  %v6473_v42 = vld [vmem:[#allocation7 + $0x888] ss:$12 sps:$4 sm:$0xff]  }
 0x313   :  { %v6480_v63 = vld [vmem:[#allocation7 + $0x8a4] ss:$12 sps:$4 sm:$0xff]  }
 0x315   :  { %5574 = vmatpush3.bf16.msra.mxu1 %v6433_v1  ;;  %v6478_v1 = vld [vmem:[#allocation7 + $0x8a0] ss:$12 sps:$4 sm:$0xff]  }
 0x316   :  { %5581 = vmatprep.subr.bf16.mxu1 %v6461_v2  ;;  %v6485_v2 = vld [vmem:[#allocation7 + $0x8bc] ss:$12 sps:$4 sm:$0xff]  }
 0x36b   :  { %v3927_v5 = vpop.f32.mrb[24].mxu1 }
 0x36c   :  { %v5619_v6 = vadd.f32 %v3927_v5, %v3353_v4  ;;  %v3929_v7 = vpop.f32.mrb[25].mxu1  ;;  %v6488_v5 = vld [vmem:[#allocation7 + $0x8d0] ss:$12 sps:$4 sm:$0xff]  }
 0x36d   :  { %v5620_v50 = vadd.f32 %v3929_v7, %v3357_v44  ;;  %v3931_v13 = vpop.f32.mrb[26].mxu1  ;;  %v6493_v7 = vld [vmem:[#allocation7 + $0x8e8] ss:$12 sps:$4 sm:$0xff]  }
 0x36e   :  { %v5621_v14 = vadd.f32 %v3931_v13, %v3353_v4  ;;  %v3933_v15 = vpop.f32.mrb[27].mxu1  ;;  %v4022_v18 = vmax.f32 %v5619_v6, 0.0  ;;  %v6483_v4 = vld [vmem:[#allocation7 + $0x8b8] ss:$12 sps:$4 sm:$0xff]   ;;  %v3365_v13 = vrot.slane %v6757_v3, %v6703_v12 }
 0x36f   :  { %v5622_v17 = vadd.f32 %v3933_v15, %v3357_v44  ;;  %v4023_v21 = vmax.f32 %v5620_v50, 0.0  ;;  %v6490_v44 = vld [vmem:[#allocation7 + $0x8d4] ss:$12 sps:$4 sm:$0xff]   ;;  %v6495_v6 = vld [vmem:[#allocation7 + $0x8ec] ss:$12 sps:$4 sm:$0xff]   ;;  %v3361_v50 = vrot.slane %v6757_v3, %v6699_v10 }
 0x370   :  { %v4026_v19 = vmax.f32 %v5621_v14, 0.0 }
 0x371   :  { %v4027_v22 = vmax.f32 %v5622_v17, 0.0 }
 0x372   :  { %v4030_v23 = vpack.c.bf16 %v4026_v19, %v4022_v18 }
 0x373   :  { %v4031_v24 = vpack.c.bf16 %v4027_v22, %v4023_v21 }
 0x375   :  { %4706 = vmatprep.mubr.bf16.mxu0 %v4031_v24  ;;  %4792 = vmatprep.mubr.bf16.mxu1 %v4031_v24 }
 0x376   :  { %4707 = vmatmul.mubr.bf16.vlgmr.msra.gmra.mrb[8].mxu0 %v4030_v23  ;;  %4793 = vmatmul.mubr.bf16.vlgmr.msra.gmra.mrb[32].mxu1 %v4030_v23 }
 0x377   :  { %4718 = vmatpush1.bf16.msra.mxu0 %v6434_v8  ;;  %5582 = vmatpush3.bf16.msra.mxu1 %v6462_v25 }
 0x378   :  { %4719 = vmatprep.subr.bf16.mxu0 %v6439_v26  ;;  %5583 = vmatprep.subr.bf16.mxu1 %v6466_v16 }
 0x37b   :  { %4720 = vmatpush1.bf16.msra.mxu0 %v6437_v27  ;;  %5584 = vmatpush3.bf16.msra.mxu1 %v6467_v28 }
 0x37c   :  { %4721 = vmatprep.subr.bf16.mxu0 %v6442_v29  ;;  %5585 = vmatprep.subr.bf16.mxu1 %v6471_v30 }
 0x37f   :  { %4722 = vmatpush1.bf16.msra.mxu0 %v6440_v31  ;;  %5586 = vmatpush3.bf16.msra.mxu1 %v6472_v32  ;;  %v4848_v32 = vld [vmem:[%s6794_s4] sm:$0x7]  ;;  %s6602_s4 = smov [#allocation8]  }
 0x380   :  { %4723 = vmatprep.subr.bf16.mxu0 %v6445_v33  ;;  %5587 = vmatprep.subr.bf16.mxu1 %v6476_v34  ;;  %v4853_v33 = vrot.slane %v4848_v32, %v6697_v9  ;;  %v4857_v34 = vrot.slane %v4848_v32, %v6701_v11  ;;  %s4882_s14 = sshll.u32 %s6602_s4, 4  ;;  %s4883_s14 = int_to_ptr.vmem [resolvable:$true] %s4882_s14 }
 0x381   :  { %s6564_s15 = scalar_lea.vmem %s4883_s14, 768  ;;  %p6569_p11 = scmp.lt.s32.totalorder %s4883_s14, %s4883_s14 }
 0x382   :  { %p6565_p10 = scmp.ne.s32.totalorder %s4883_s14, %s6564_s15  ;;  %p6570_p12 = scmp.lt.s32.totalorder %s6564_s15, %s6564_s15 }
 0x383   :  { %4724 = vmatpush1.bf16.msra.mxu0 %v6443_v35  ;;  %5588 = vmatpush3.bf16.msra.mxu1 %v6477_v36 }
 0x384   :  { %4725 = vmatprep.subr.bf16.mxu0 %v6448_v37  ;;  %5589 = vmatprep.subr.bf16.mxu1 %v6481_v38  ;;  %p6571_p13 = por %p6570_p12, %p6569_p11 }
 0x386   :  { %p6572_p0 = pnand %p6571_p13, %p6565_p10 }
 0x387   :  { %4726 = vmatpush1.bf16.msra.mxu0 %v6446_v39  ;;  %5590 = vmatpush3.bf16.msra.mxu1 %v6482_v40 }
 0x388   :  { %4727 = vmatprep.subr.bf16.mxu0 %v6451_v41  ;;  %5591 = vmatprep.subr.bf16.mxu1 %v6486_v47 }
 0x38b   :  { %4728 = vmatpush1.bf16.msra.mxu0 %v6449_v48  ;;  %5592 = vmatpush3.bf16.msra.mxu1 %v6487_v49 }
 0x38c   :  { %4729 = vmatprep.subr.bf16.mxu0 %v6454_v51  ;;  %5593 = vmatprep.subr.bf16.mxu1 %v6491_v20 }
 0x38f   :  { %4730 = vmatpush1.bf16.msra.mxu0 %v6452_v52  ;;  %5594 = vmatpush3.bf16.msra.mxu1 %v6492_v53  ;;  %v4861_v52 = vrot.slane %v4848_v32, %v6699_v10 }
 0x390   :  { %4731 = vmatprep.subr.bf16.mxu0 %v6457_v45  ;;  %5595 = vmatprep.subr.bf16.mxu1 %v6496_v54 }
 0x393   :  { %4732 = vmatpush1.bf16.msra.mxu0 %v6455_v55  ;;  %5596 = vmatpush3.bf16.msra.mxu1 %v6497_v56 }
 0x394   :  { %4733 = vmatprep.subr.bf16.mxu0 %v6460_v43 }
 0x397   :  { %4734 = vmatpush1.bf16.msra.mxu0 %v6458_v57 }
 0x398   :  { %4735 = vmatprep.subr.bf16.mxu0 %v6465_v58 }
 0x39b   :  { %4736 = vmatpush1.bf16.msra.mxu0 %v6463_v59 }
 0x39c   :  { %4737 = vmatprep.subr.bf16.mxu0 %v6470_v60 }
 0x39f   :  { %4738 = vmatpush1.bf16.msra.mxu0 %v6468_v61 }
 0x3a0   :  { %4739 = vmatprep.subr.bf16.mxu0 %v6475_v62 }
 0x3a3   :  { %4740 = vmatpush1.bf16.msra.mxu0 %v6473_v42 }
 0x3a4   :  { %4741 = vmatprep.subr.bf16.mxu0 %v6480_v63 }
 0x3a7   :  { %4742 = vmatpush1.bf16.msra.mxu0 %v6478_v1 }
 0x3a8   :  { %4743 = vmatprep.subr.bf16.mxu0 %v6485_v2 }
 0x3ab   :  { %4744 = vmatpush1.bf16.msra.mxu0 %v6483_v4 }
 0x3ac   :  { %4745 = vmatprep.subr.bf16.mxu0 %v6490_v44 }
 0x3af   :  { %4746 = vmatpush1.bf16.msra.mxu0 %v6488_v5 }
 0x3b0   :  { %4747 = vmatprep.subr.bf16.mxu0 %v6495_v6 }
 0x3b3   :  { %4748 = vmatpush1.bf16.msra.mxu0 %v6493_v7 }
 0x3cb   :  { %v4013_v14 = vpop.f32.mrb[28].mxu1 }
 0x3cc   :  { %v5623_v15 = vadd.f32 %v4013_v14, %v3361_v50  ;;  %v4015_v17 = vpop.f32.mrb[29].mxu1 }
 0x3cd   :  { %v5624_v18 = vadd.f32 %v4015_v17, %v3365_v13  ;;  %v4017_v19 = vpop.f32.mrb[30].mxu1 }
 0x3ce   :  { %v5625_v21 = vadd.f32 %v4017_v19, %v3361_v50  ;;  %v4019_v22 = vpop.f32.mrb[31].mxu1  ;;  %v4024_v24 = vmax.f32 %v5623_v15, 0.0 }
 0x3cf   :  { %v5626_v23 = vadd.f32 %v4019_v22, %v3365_v13  ;;  %v4025_v25 = vmax.f32 %v5624_v18, 0.0 }
 0x3d0   :  { %v4028_v8 = vmax.f32 %v5625_v21, 0.0 }
 0x3d1   :  { %v4029_v26 = vmax.f32 %v5626_v23, 0.0 }
 0x3d2   :  { %v4032_v16 = vpack.c.bf16 %v4028_v8, %v4024_v24 }
 0x3d3   :  { %v4033_v27 = vpack.c.bf16 %v4029_v26, %v4025_v25 }
 0x3d5   :  { %4749 = vmatprep.mubr.bf16.mxu0 %v4033_v27  ;;  %4833 = vmatprep.mubr.bf16.mxu1 %v4033_v27 }
 0x3d6   :  { %4750 = vmatmul.mubr.bf16.vlgmr.msra.gmra.mrb[8].mxu0 %v4032_v16  ;;  %4834 = vmatmul.mubr.bf16.vlgmr.msra.gmra.mrb[36].mxu1 %v4032_v16 }
 0x449   :  { %v5575_v28 = vpop.f32.mrb[32].mxu1 }
 0x44a   :  { %v5576_v12 = vpop.f32.mrb[33].mxu1 }
 0x44b   :  { %v5577_v3 = vadd.f32 %v5576_v12, %v5575_v28  ;;  %v5578_v29 = vpop.f32.mrb[34].mxu1 }
 0x44c   :  { %v5579_v30 = vpop.f32.mrb[35].mxu1 }
 0x44d   :  { %v5580_v31 = vadd.f32 %v5579_v30, %v5578_v29 }
 0x4a9   :  { %v4751_v35 = vpop.f32.mrb[8].mxu0  ;;  %v5597_v36 = vpop.f32.mrb[36].mxu1 }
 0x4aa   :  { %v4865_v37 = vadd.f32 %v4853_v33, %v4751_v35  ;;  %v4753_v38 = vpop.f32.mrb[9].mxu0  ;;  %v5598_v39 = vpop.f32.mrb[37].mxu1 }
 0x4ab   :  { %v4866_v40 = vadd.f32 %v4857_v34, %v4753_v38  ;;  %v5599_v41 = vadd.f32 %v5598_v39, %v5597_v36  ;;  %v4755_v47 = vpop.f32.mrb[10].mxu0  ;;  %v5600_v48 = vpop.f32.mrb[38].mxu1 }
 0x4ac   :  { %4871 = vst [vmem:[#allocation8] sm:$0xff] %v4865_v37  ;;  %v4868_v49 = vadd.f32 %v4853_v33, %v4755_v47  ;;  %v4757_v51 = vpop.f32.mrb[11].mxu0  ;;  %v5601_v20 = vpop.f32.mrb[39].mxu1 }
 0x4ad   :  { %4872 = vst [vmem:[#allocation8 + $0x8] sm:$0xff] %v4866_v40  ;;  %v4836_v53 = vadd.f32 %v5599_v41, %v5577_v3  ;;  %v4869_v9 = vadd.f32 %v4857_v34, %v4757_v51  ;;  %v5602_v45 = vadd.f32 %v5601_v20, %v5600_v48 }
 0x4ae   :  { %4874 = vst [vmem:[#allocation8 + $0x18] sm:$0xff] %v4868_v49 }
 0x4af   :  { %v4844_v11 = vadd.f32 %v4836_v53, %v6750_v46  ;;  %4875 = vst [vmem:[#allocation8 + $0x20] sm:$0xff] %v4869_v9  ;;  %v4839_v54 = vadd.f32 %v5602_v45, %v5580_v31 }
 0x4b1   :  { %v4867_v55 = vadd.f32 %v4861_v52, %v4844_v11  ;;  %v4847_v56 = vadd.f32 %v4839_v54, %v6752_v0 }
 0x4b3   :  { %4873 = vst [vmem:[#allocation8 + $0x10] sm:$0xff] %v4867_v55  ;;  %v4870_v43 = vadd.f32 %v4861_v52, %v4847_v56 }
 0x4b5   :  { %4876 = vst [vmem:[#allocation8 + $0x28] sm:$0xff] %v4870_v43 }
 0x4b6   :  { %6575 = shalt.err (!%p6572_p0)
}
 0x4b7   :  { %s6576_s19 = scalar_lea.hbm %s6795_s5, 768 }
 0x4b8   :  { %p6577_p1 = scmp.ne.s32.totalorder %s6795_s5, %s6576_s19  ;;  %p6580_p2 = scmp.lt.u32.totalorder %s6576_s19, %s6795_s5 }
 0x4ba   :  { %p6582_p3 = pnand %p6580_p2, %p6577_p1 }
 0x4bc   :  { %6585 = shalt.err (!%p6582_p3)
}
 0x4bd   :  { %4888 = dma.vmem_to_hbm [thread:$0]  %s4883_s14, 768, %s6795_s5, [#allocation4], %s6596_s1, %s6596_s1, %s6597_s17  }
 0x4be   :  { %6590 = dma.done.wait [#allocation4], 768  }
 0x4bf   :  { %6591 = vsyncadd [#allocation4], 4294966528 }
 0x4c0   :  { %4892 = vsyncpa [#allocation3], 1 }
 0x4c1   :  { %4893 = vsyncpa [#allocation6], 1 }
 0x4c2   :  { %4894 = vsyncpa [#allocation4], 1 }

</bundles_post_ra>
